<compile_context>
chip_gen: v6e
topology: v6e:2x2x1
jax: 0.10.0
libtpu: 0.0.40
codegen_flags: <defaults>
</compile_context>

<pallas_src>
import math
import jax
import jax.numpy as jnp
from jax import lax
from jax.experimental import pallas as pl
from jax.experimental.pallas import tpu as pltpu


_SQRT2_INV = 1.0 / math.sqrt(2.0)


def _gelu(x):
    # exact erf-based gelu, matching the PyTorch reference
    return x * 0.5 * (1.0 + lax.erf(x * _SQRT2_INV))


def highway_kernel(x_ref,
                   w1_ref, b1_ref,
                   w2_ref, b2_ref,
                   wfc_ref, bfc_ref,
                   out_ref):
    """One (tile_m, D) row-tile through 2 highway layers + final projection.

    w1/w2 are fused [linear | gate] weights of shape (D, 2D); wfc is
    (D, h_out). Matmuls run in the weights' dtype (f32 = exact parity,
    bf16 = fast MXU path) with f32 accumulation; the residual / highway
    combine is kept in f32.
    """
    cdt = w1_ref.dtype
    D = x_ref.shape[-1]

    x_in = x_ref[...].astype(cdt)            # matmul operand (no-op cast on matched dtypes)
    x32 = x_ref[...].astype(jnp.float32)     # residual kept in f32

    def hw_layer(x32, x_in, w_ref, b_ref):
        # Single fused (tile_m, 2D) matmul: columns [:D] = linear, [D:] = gate.
        ht = jnp.dot(x_in, w_ref[...],
                     preferred_element_type=jnp.float32) + b_ref[...]
        h = _gelu(ht[:, :D])
        t = jax.nn.sigmoid(ht[:, D:])
        # t*h + (1-t)*x == t*(h-x) + x   (one sub + one FMA on the VPU)
        y32 = t * (h - x32) + x32
        return y32, y32.astype(cdt)          # one cast per layer output (bf16 path only)

    x32, x_in = hw_layer(x32, x_in, w1_ref, b1_ref)
    x32, x_in = hw_layer(x32, x_in, w2_ref, b2_ref)

    y = jnp.dot(x_in, wfc_ref[...],
                preferred_element_type=jnp.float32) + bfc_ref[...]
    out_ref[...] = y.astype(out_ref.dtype)


def _round_up(n, m):
    return ((n + m - 1) // m) * m


def _choose_tile_m(M, tile_m):
    """Shrink tile_m so the grid has >=2 steps when possible (keeps both v7x
    TensorCores busy) while staying sublane/MXU friendly."""
    if M >= 2 * tile_m:
        return tile_m
    if M > 256:
        return max(256, _round_up(pl.cdiv(M, 2), 256))
    return min(tile_m, max(8, _round_up(M, 8)))


def _vmem_limit_bytes(tile_m, D, h_out, in_itemsize, out_itemsize, weight_bytes):
    # double-buffered I/O blocks + resident weights + generous f32 temporaries
    io = 2 * tile_m * D * in_itemsize + 2 * tile_m * h_out * out_itemsize
    scratch = 2 * tile_m * (4 * D + h_out) * 4
    est = io + 2 * weight_bytes + scratch + (4 << 20)
    # never below the common scoped default, never above v7x physical VMEM
    return int(min(max(est, 32 << 20), 64 << 20))


def highway_forward(x, params, *, tile_m=512):
    """x: (B, T, D).  params: dict of transposed weights & f32 biases."""
    B, T, D = x.shape
    h_out = params["wfc"].shape[1]
    M = B * T
    w_dtype = params["wl1"].dtype

    # Fuse each layer's linear + gate into one (D, 2D) weight / (1, 2D) bias.
    w1 = jnp.concatenate([params["wl1"], params["wg1"]], axis=1)
    b1 = jnp.concatenate([params["bl1"], params["bg1"]], axis=1)
    w2 = jnp.concatenate([params["wl2"], params["wg2"]], axis=1)
    b2 = jnp.concatenate([params["bl2"], params["bg2"]], axis=1)
    weight_args = (w1, b1, w2, b2, params["wfc"], params["bfc"])

    x2d = x.reshape(M, D)
    if w_dtype == jnp.bfloat16:
        # Fast path: bf16 activations halve HBM input traffic (the kernel is
        # bandwidth-bound at these sizes); accumulation stays f32 in-kernel.
        x2d = x2d.astype(jnp.bfloat16)

    tile_m = _choose_tile_m(M, tile_m)
    num_tiles = pl.cdiv(M, tile_m)
    out_dtype = x.dtype

    # Full-array blocks, same block every grid step -> stays VMEM-resident.
    def full_spec(arr):
        nd = arr.ndim
        return pl.BlockSpec(arr.shape, lambda i, _n=nd: (0,) * _n)

    in_specs = [pl.BlockSpec((tile_m, D), lambda i: (i, 0))] + \
               [full_spec(w) for w in weight_args]
    out_specs = pl.BlockSpec((tile_m, h_out), lambda i: (i, 0))

    weight_bytes = sum(int(w.size) * w.dtype.itemsize for w in weight_args)
    cost = pl.CostEstimate(
        flops=2 * M * D * (4 * D + h_out),
        transcendentals=4 * M * D,  # 2x erf + 2x sigmoid per element
        bytes_accessed=M * D * x2d.dtype.itemsize + weight_bytes
                       + M * h_out * jnp.dtype(out_dtype).itemsize,
    )
    vmem_limit = _vmem_limit_bytes(tile_m, D, h_out,
                                   x2d.dtype.itemsize,
                                   jnp.dtype(out_dtype).itemsize,
                                   weight_bytes)

    out2d = pl.pallas_call(
        highway_kernel,
        out_shape=jax.ShapeDtypeStruct((M, h_out), out_dtype),
        grid_spec=pltpu.PrefetchScalarGridSpec(
            num_scalar_prefetch=0,
            grid=(num_tiles,),
            in_specs=in_specs,
            out_specs=out_specs,
        ),
        compiler_params=pltpu.CompilerParams(
            dimension_semantics=("parallel",),
            vmem_limit_bytes=vmem_limit),
        cost_estimate=cost,
    )(x2d, *weight_args)

    return out2d.reshape(B, T, h_out)


def init_params(key, h_size, h_out):
    """Deterministic synthetic parameters. Weights stored as (in, out), f32."""
    ks = jax.random.split(key, 5)

    def lin(k, fan_in, fan_out):
        kw, kb = jax.random.split(k)
        bound = 1.0 / math.sqrt(fan_in)
        w = jax.random.uniform(kw, (fan_in, fan_out), jnp.float32, -bound, bound)
        b = jax.random.uniform(kb, (1, fan_out), jnp.float32, -bound, bound)
        return w, b

    wl1, bl1 = lin(ks[0], h_size, h_size)
    wg1, bg1 = lin(ks[1], h_size, h_size)
    wl2, bl2 = lin(ks[2], h_size, h_size)
    wg2, bg2 = lin(ks[3], h_size, h_size)
    wfc, bfc = lin(ks[4], h_size, h_out)
    return dict(wl1=wl1, bl1=bl1, wg1=wg1, bg1=bg1,
                wl2=wl2, bl2=bl2, wg2=wg2, bg2=bg2,
                wfc=wfc, bfc=bfc)


def highway_ref(x, p):
    """Pure-JAX reference of the PyTorch forward (f32), for correctness check."""
    def layer(x, w, b, wg, bg):
        h = _gelu(x @ w + b)
        t = jax.nn.sigmoid(x @ wg + bg)
        return t * h + (1.0 - t) * x
    x = layer(x, p["wl1"], p["bl1"][0], p["wg1"], p["bg1"][0])
    x = layer(x, p["wl2"], p["bl2"][0], p["wg2"], p["bg2"][0])
    return x @ p["wfc"] + p["bfc"][0]


if __name__ == "__main__":
    # Lane-dense sizes: D and h_out multiples of 128; M = B*T = 512 gives two
    # 256-row grid steps (keeps both v7x TensorCores busy).
    B, T, h_size, h_out = 4, 128, 128, 128

    key = jax.random.PRNGKey(0)
    kx, kp = jax.random.split(key)
    x = jax.random.normal(kx, (B, T, h_size), jnp.float32)
    params = init_params(kp, h_size, h_out)
    ref = highway_ref(x, params)

    # 1) f32 weights: exact-parity path.
    out = jax.block_until_ready(highway_forward(x, params))
    assert out.shape == (B, T, h_out), out.shape
    assert jnp.allclose(out, ref, atol=2e-4, rtol=2e-4), float(
        jnp.max(jnp.abs(out - ref)))

    # 2) Ragged M (B*T not a multiple of the tile): handled by Pallas
    #    boundary blocks (no wrapper pad / slice).
    xr = jax.random.normal(jax.random.PRNGKey(1), (2, 10, h_size), jnp.float32)
    outr = jax.block_until_ready(highway_forward(xr, params))
    refr = highway_ref(xr, params)
    assert outr.shape == (2, 10, h_out), outr.shape
    assert jnp.allclose(outr, refr, atol=2e-4, rtol=2e-4), float(
        jnp.max(jnp.abs(outr - refr)))

    # 3) bf16 weights + activations: fast MXU / half-HBM path; loose check.
    params_bf16 = {k: (v.astype(jnp.bfloat16) if k.startswith("w") else v)
                   for k, v in params.items()}
    out_bf16 = jax.block_until_ready(highway_forward(x, params_bf16))
    assert float(jnp.max(jnp.abs(out_bf16 - ref))) < 0.25

    print("KERNEL_OK")
</pallas_src>

<mosaic_0001>
module attributes {stable_mosaic.version = 11 : i64} {
  func.func @highway_kernel(%arg0: i32, %arg1: memref<256x128xf32, #tpu.memory_space<vmem>>, %arg2: memref<128x256xf32, #tpu.memory_space<vmem>>, %arg3: memref<1x256xf32, #tpu.memory_space<vmem>>, %arg4: memref<128x256xf32, #tpu.memory_space<vmem>>, %arg5: memref<1x256xf32, #tpu.memory_space<vmem>>, %arg6: memref<128x128xf32, #tpu.memory_space<vmem>>, %arg7: memref<1x128xf32, #tpu.memory_space<vmem>>, %arg8: memref<256x128xf32, #tpu.memory_space<vmem>>) attributes {dimension_semantics = [#tpu.dimension_semantics<parallel>], iteration_bounds = array<i64: 2>, scalar_prefetch = 0 : i64, scratch_operands = 0 : i64, tpu.core_type = #tpu.core_type<tc>, window_params = [{transform_indices = @transform_0, window_bounds = array<i64: 256, 128>}, {pipeline_mode = #tpu.pipeline_mode<synchronous>, transform_indices = @transform_1, window_bounds = array<i64: 128, 256>}, {pipeline_mode = #tpu.pipeline_mode<synchronous>, transform_indices = @transform_2, window_bounds = array<i64: 1, 256>}, {pipeline_mode = #tpu.pipeline_mode<synchronous>, transform_indices = @transform_3, window_bounds = array<i64: 128, 256>}, {pipeline_mode = #tpu.pipeline_mode<synchronous>, transform_indices = @transform_4, window_bounds = array<i64: 1, 256>}, {pipeline_mode = #tpu.pipeline_mode<synchronous>, transform_indices = @transform_5, window_bounds = array<i64: 128, 128>}, {pipeline_mode = #tpu.pipeline_mode<synchronous>, transform_indices = @transform_6, window_bounds = array<i64: 1, 128>}, {transform_indices = @transform_7, window_bounds = array<i64: 256, 128>}]} {
    %c0 = arith.constant 0 : index
    %c0_0 = arith.constant 0 : index
    %0 = vector.load %arg1[%c0, %c0_0] : memref<256x128xf32, #tpu.memory_space<vmem>>, vector<256x128xf32>
    %c0_1 = arith.constant 0 : index
    %c0_2 = arith.constant 0 : index
    %1 = vector.load %arg1[%c0_1, %c0_2] : memref<256x128xf32, #tpu.memory_space<vmem>>, vector<256x128xf32>
    %c0_3 = arith.constant 0 : index
    %c0_4 = arith.constant 0 : index
    %2 = vector.load %arg2[%c0_3, %c0_4] : memref<128x256xf32, #tpu.memory_space<vmem>>, vector<128x256xf32>
    %cst = arith.constant dense<0.000000e+00> : vector<256x256xf32>
    %3 = tpu.matmul %0, %2, %cst {dimension_numbers = #tpu.dot_dimension_numbers<[1], [0], [0], [1], [0, 0, 1, 1], [], []>} : vector<256x128xf32>, vector<128x256xf32>, vector<256x256xf32> -> vector<256x256xf32>
    %c0_5 = arith.constant 0 : index
    %c0_6 = arith.constant 0 : index
    %4 = vector.load %arg3[%c0_5, %c0_6] : memref<1x256xf32, #tpu.memory_space<vmem>>, vector<1x256xf32>
    %5 = vector.broadcast %4 : vector<1x256xf32> to vector<256x256xf32>
    %6 = arith.addf %3, %5 : vector<256x256xf32>
    %7 = vector.extract_strided_slice %6 {offsets = [0, 0], sizes = [256, 128], strides = [1, 1]} : vector<256x256xf32> to vector<256x128xf32>
    %cst_7 = arith.constant 5.000000e-01 : f32
    %8 = vector.broadcast %cst_7 : f32 to vector<256x128xf32>
    %9 = arith.mulf %7, %8 : vector<256x128xf32>
    %cst_8 = arith.constant 0.707106769 : f32
    %10 = vector.broadcast %cst_8 : f32 to vector<256x128xf32>
    %11 = arith.mulf %7, %10 : vector<256x128xf32>
    %12 = math.erf %11 : vector<256x128xf32>
    %cst_9 = arith.constant 1.000000e+00 : f32
    %13 = vector.broadcast %cst_9 : f32 to vector<256x128xf32>
    %14 = arith.addf %13, %12 : vector<256x128xf32>
    %15 = arith.mulf %9, %14 : vector<256x128xf32>
    %16 = vector.extract_strided_slice %6 {offsets = [0, 128], sizes = [256, 128], strides = [1, 1]} : vector<256x256xf32> to vector<256x128xf32>
    %17 = arith.negf %16 : vector<256x128xf32>
    %18 = math.exp %17 : vector<256x128xf32>
    %cst_10 = arith.constant 1.000000e+00 : f32
    %19 = vector.broadcast %cst_10 : f32 to vector<256x128xf32>
    %20 = arith.addf %19, %18 : vector<256x128xf32>
    %21 = arith.divf %19, %20 : vector<256x128xf32>
    %22 = arith.subf %15, %1 : vector<256x128xf32>
    %23 = arith.mulf %21, %22 : vector<256x128xf32>
    %24 = arith.addf %23, %1 : vector<256x128xf32>
    %c0_11 = arith.constant 0 : index
    %c0_12 = arith.constant 0 : index
    %25 = vector.load %arg4[%c0_11, %c0_12] : memref<128x256xf32, #tpu.memory_space<vmem>>, vector<128x256xf32>
    %cst_13 = arith.constant dense<0.000000e+00> : vector<256x256xf32>
    %26 = tpu.matmul %24, %25, %cst_13 {dimension_numbers = #tpu.dot_dimension_numbers<[1], [0], [0], [1], [0, 0, 1, 1], [], []>} : vector<256x128xf32>, vector<128x256xf32>, vector<256x256xf32> -> vector<256x256xf32>
    %c0_14 = arith.constant 0 : index
    %c0_15 = arith.constant 0 : index
    %27 = vector.load %arg5[%c0_14, %c0_15] : memref<1x256xf32, #tpu.memory_space<vmem>>, vector<1x256xf32>
    %28 = vector.broadcast %27 : vector<1x256xf32> to vector<256x256xf32>
    %29 = arith.addf %26, %28 : vector<256x256xf32>
    %30 = vector.extract_strided_slice %29 {offsets = [0, 0], sizes = [256, 128], strides = [1, 1]} : vector<256x256xf32> to vector<256x128xf32>
    %cst_16 = arith.constant 5.000000e-01 : f32
    %31 = vector.broadcast %cst_16 : f32 to vector<256x128xf32>
    %32 = arith.mulf %30, %31 : vector<256x128xf32>
    %cst_17 = arith.constant 0.707106769 : f32
    %33 = vector.broadcast %cst_17 : f32 to vector<256x128xf32>
    %34 = arith.mulf %30, %33 : vector<256x128xf32>
    %35 = math.erf %34 : vector<256x128xf32>
    %cst_18 = arith.constant 1.000000e+00 : f32
    %36 = vector.broadcast %cst_18 : f32 to vector<256x128xf32>
    %37 = arith.addf %36, %35 : vector<256x128xf32>
    %38 = arith.mulf %32, %37 : vector<256x128xf32>
    %39 = vector.extract_strided_slice %29 {offsets = [0, 128], sizes = [256, 128], strides = [1, 1]} : vector<256x256xf32> to vector<256x128xf32>
    %40 = arith.negf %39 : vector<256x128xf32>
    %41 = math.exp %40 : vector<256x128xf32>
    %cst_19 = arith.constant 1.000000e+00 : f32
    %42 = vector.broadcast %cst_19 : f32 to vector<256x128xf32>
    %43 = arith.addf %42, %41 : vector<256x128xf32>
    %44 = arith.divf %42, %43 : vector<256x128xf32>
    %45 = arith.subf %38, %24 : vector<256x128xf32>
    %46 = arith.mulf %44, %45 : vector<256x128xf32>
    %47 = arith.addf %46, %24 : vector<256x128xf32>
    %c0_20 = arith.constant 0 : index
    %c0_21 = arith.constant 0 : index
    %48 = vector.load %arg6[%c0_20, %c0_21] : memref<128x128xf32, #tpu.memory_space<vmem>>, vector<128x128xf32>
    %cst_22 = arith.constant dense<0.000000e+00> : vector<256x128xf32>
    %49 = tpu.matmul %47, %48, %cst_22 {dimension_numbers = #tpu.dot_dimension_numbers<[1], [0], [0], [1], [0, 0, 1, 1], [], []>} : vector<256x128xf32>, vector<128x128xf32>, vector<256x128xf32> -> vector<256x128xf32>
    %c0_23 = arith.constant 0 : index
    %c0_24 = arith.constant 0 : index
    %50 = vector.load %arg7[%c0_23, %c0_24] : memref<1x128xf32, #tpu.memory_space<vmem>>, vector<1x128xf32>
    %51 = vector.broadcast %50 : vector<1x128xf32> to vector<256x128xf32>
    %52 = arith.addf %49, %51 : vector<256x128xf32>
    %c0_25 = arith.constant 0 : index
    %c0_26 = arith.constant 0 : index
    %53 = vector.load %arg8[%c0_25, %c0_26] : memref<256x128xf32, #tpu.memory_space<vmem>>, vector<256x128xf32>
    tpu.vector_store %arg8[%c0_25, %c0_26], %52 {strides = array<i32>} : memref<256x128xf32, #tpu.memory_space<vmem>>, vector<256x128xf32>,
    return
  }
  func.func @transform_0(%arg0: i32) -> (i32, i32) {
    %c0_i32 = arith.constant 0 : i32
    %c0_i32_0 = arith.constant 0 : i32
    return %arg0, %c0_i32 : i32, i32
  }
  func.func @transform_1(%arg0: i32) -> (i32, i32) {
    %c0_i32 = arith.constant 0 : i32
    %c0_i32_0 = arith.constant 0 : i32
    %c0_i32_1 = arith.constant 0 : i32
    return %c0_i32, %c0_i32_0 : i32, i32
  }
  func.func @transform_2(%arg0: i32) -> (i32, i32) {
    %c0_i32 = arith.constant 0 : i32
    %c0_i32_0 = arith.constant 0 : i32
    %c0_i32_1 = arith.constant 0 : i32
    return %c0_i32, %c0_i32_0 : i32, i32
  }
  func.func @transform_3(%arg0: i32) -> (i32, i32) {
    %c0_i32 = arith.constant 0 : i32
    %c0_i32_0 = arith.constant 0 : i32
    %c0_i32_1 = arith.constant 0 : i32
    return %c0_i32, %c0_i32_0 : i32, i32
  }
  func.func @transform_4(%arg0: i32) -> (i32, i32) {
    %c0_i32 = arith.constant 0 : i32
    %c0_i32_0 = arith.constant 0 : i32
    %c0_i32_1 = arith.constant 0 : i32
    return %c0_i32, %c0_i32_0 : i32, i32
  }
  func.func @transform_5(%arg0: i32) -> (i32, i32) {
    %c0_i32 = arith.constant 0 : i32
    %c0_i32_0 = arith.constant 0 : i32
    %c0_i32_1 = arith.constant 0 : i32
    return %c0_i32, %c0_i32_0 : i32, i32
  }
  func.func @transform_6(%arg0: i32) -> (i32, i32) {
    %c0_i32 = arith.constant 0 : i32
    %c0_i32_0 = arith.constant 0 : i32
    %c0_i32_1 = arith.constant 0 : i32
    return %c0_i32, %c0_i32_0 : i32, i32
  }
  func.func @transform_7(%arg0: i32) -> (i32, i32) {
    %c0_i32 = arith.constant 0 : i32
    %c0_i32_0 = arith.constant 0 : i32
    return %arg0, %c0_i32 : i32, i32
  }
}

</mosaic_0001>

<bundles_post_ra>
// kernel: tpu_custom_call.1
= control target key start
LH: loop header
LB: loop body
LE: loop exit
PB: predicated region body
PF: predicated region fallthrough
CT: control target
= control target key end

     0   :  { %s4317_s0 = inlined_call_operand.hbm [shape: f32[512,128], index: 0, kind: input, shape index: {}]   ;;  %s4318_s1 = inlined_call_operand.hbm [shape: f32[128,256], index: 1, kind: input, shape index: {}]   ;;  %s4319_s2 = inlined_call_operand.vmem [shape: f32[1,256], index: 2, kind: input, shape index: {}]   ;;  %s4320_s3 = inlined_call_operand.hbm [shape: f32[128,256], index: 3, kind: input, shape index: {}]   ;;  %s4321_s4 = inlined_call_operand.vmem [shape: f32[1,256], index: 4, kind: input, shape index: {}]   ;;  %s4322_s5 = inlined_call_operand.hbm [shape: f32[128,128], index: 5, kind: input, shape index: {}]   ;;  %s4323_s6 = inlined_call_operand.vmem [shape: f32[1,128], index: 6, kind: input, shape index: {}]   ;;  %s4324_s7 = inlined_call_operand.hbm [shape: f32[512,128], index: 7, kind: output, shape index: {}]  }
   0x1   :  { %4331 = sst [smem:[#allocation15_spill]] %s4318_s1 }
   0x2   :  { %12 = vsyncpa [#allocation3], 0 }
   0x3   :  { %14 = vsyncpa [#allocation3 + $0x1], 0 }
   0x4   :  { %15 = vsyncpa [#allocation6], 0 }
   0x5   :  { %16 = vsyncpa [#allocation9], 0 }
   0x6   :  { %17 = vsyncpa [#allocation4], 0 }
   0x7   :  { %19 = vsyncpa [#allocation4 + $0x1], 0  ;;  %s3234_s24 = smov 0   ;;  %s3236_s25 = smov 0  }
   0x8   :  { %s3238_s26 = smov 0   ;;  %s3240_s27 = smov 0  }
   0x9 LB: > { %s3255_s28 = sadd.s32 4294967295, %s3180_s27   ;;  %s2269_s29 = sadd.s32 4294967294, %s3180_s27   ;;  %s3180_s27 = sphi %s3240_s27, %s4354_s27   ;;  %s3176_s26 = sphi %s3238_s26, %s4353_s26   ;;  %s3172_s25 = sphi %s3236_s25, %s4352_s25   ;;  %s3168_s24 = sphi %s3234_s24, %s4351_s24  }
   0xa   : > { %p45_p0 = scmp.ne.s32.totalorder %s3172_s25, %s3168_s24  ;;  %p4325_p1 = scmp.eq.s32.totalorder %s3255_s28, 0 }
   0xb   : > { %p201_p3 = scmp.eq.s32.totalorder %s2269_s29, 1  ;;  %p2270_p5 = scmp.ge.s32.totalorder %s3180_s27, 1 }
   0xc   : > { %p3264_p4 = por %p4325_p1, %p45_p0  ;;  %p208_p7 = scmp.lt.s32.totalorder %s3180_s27, 3 }
   0xd   : > { %p3269_p6 = por %p201_p3, %p45_p0  ;;  %s3182_s10 = smov [#allocation5]  }
   0xe   : > { %s4332_s30 = scalar_select %p3264_p4, 1, 0 }
   0xf   : > { %s4333_s8 = scalar_select %p3269_p6, 1, 0 }
  0x10   : > { %p3274_p8 = pnand %p2270_p5, %p208_p7  ;;  %s220_s11 = sshll.u32 %s3182_s10, 4  ;;  %s221_s11 = int_to_ptr.vmem [resolvable:$true] %s220_s11 }
  0x11   : > { %s3183_s13 = smov [#allocation7]   ;;  %s3184_s15 = smov [#allocation8]  }
  0x12   : > { %s4334_s9 = scalar_select %p3274_p8, 1, 0 }
  0x13   : > { %p2532_p9 = pneg %p3274_p8  ;;  %s236_s14 = sshll.u32 %s3183_s13, 4  ;;  %s237_s14 = int_to_ptr.vmem [resolvable:$true] %s236_s14 }
  0x14   : > { %s252_s16 = sshll.u32 %s3184_s15, 4  ;;  %s3013_s17 = scalar_lea.vmem %s221_s11, 4096  ;;  %s253_s16 = int_to_ptr.vmem [resolvable:$true] %s252_s16 }
  0x15   : > { %p3283_p11 = pnand %p2532_p9, %p4325_p1  ;;  %p3014_p13 = scmp.ne.s32.totalorder %s221_s11, %s3013_s17 }
  0x16   : > { %p3021_p5 = scmp.lt.s32.totalorder %s221_s11, %s221_s11  ;;  %p3022_p7 = scmp.lt.s32.totalorder %s3013_s17, %s3013_s17 }
  0x17   : > { %p3004_p12 = pneg %p3283_p11 }
  0x18   : > { %p3023_p9 = por %p3022_p7, %p3021_p5 }
  0x19   : > { %p3016_p0 = pnand %p3014_p13, %p3004_p12 }
  0x1b   : > { %p3017_p3 = pneg %p3016_p0 }
  0x1d   : > { %p3024_p10 = pnand %p3023_p9, %p3017_p3 }
  0x1f   : > { %3027 = shalt.err (!%p3024_p10)
}
  0x20   : > { %s3185_s18 = smov 256   ;;  %s3186_s19 = smov 16  }
  0x21   : > { %s4336_s1 = sld [smem:[#allocation15_spill]]  ;;  %s3039_s22 = scalar_lea.vmem %s237_s14, 4096 }
  0x22   : > { %p3040_p1 = scmp.ne.s32.totalorder %s237_s14, %s3039_s22  ;;  %p3047_p2 = scmp.lt.s32.totalorder %s237_s14, %s237_s14 }
  0x23   : > { %p3048_p6 = scmp.lt.s32.totalorder %s3039_s22, %s3039_s22 }
  0x24   : > { %p3042_p13 = pnand %p3040_p1, %p3004_p12 }
  0x25   : > { %p3049_p5 = por %p3048_p6, %p3047_p2 }
  0x26   : > { %p3043_p0 = pneg %p3042_p13 }
  0x27   : > { %2535 = dma.hbm_to_vmem [thread:$0]  (!%p3283_p11), %s4336_s1, 4096, %s221_s11, [#allocation6], %s3185_s18, %s3185_s18, %s3186_s19  }
  0x28   : > { %p3050_p3 = pnand %p3049_p5, %p3043_p0 }
  0x2a   : > { %3053 = shalt.err (!%p3050_p3)
}
  0x2b   : > { %2538 = dma.hbm_to_vmem [thread:$0]  (!%p3283_p11), %s4320_s3, 4096, %s237_s14, [#allocation6], %s3185_s18, %s3185_s18, %s3186_s19  }
  0x2c   : > { %s3065_s10 = scalar_lea.vmem %s253_s16, 2048  ;;  %p3073_p9 = scmp.lt.s32.totalorder %s253_s16, %s253_s16 }
  0x2d   : > { %p3066_p10 = scmp.ne.s32.totalorder %s253_s16, %s3065_s10  ;;  %p3074_p13 = scmp.lt.s32.totalorder %s3065_s10, %s3065_s10 }
  0x2f   : > { %p3068_p7 = pnand %p3066_p10, %p3004_p12  ;;  %p3075_p4 = por %p3074_p13, %p3073_p9 }
  0x31   : > { %p3069_p1 = pneg %p3068_p7 }
  0x33   : > { %p3076_p2 = pnand %p3075_p4, %p3069_p1 }
  0x35   : > { %3079 = shalt.err (!%p3076_p2)
}
  0x36   : > { %s4327_s11 = smov 128   ;;  %s4328_s13 = smov 8  }
  0x37   : > { %2541 = dma.hbm_to_vmem [thread:$0]  (!%p3283_p11), %s4322_s5, 2048, %s253_s16, [#allocation9], %s4327_s11, %s4327_s11, %s4328_s13  }
  0x38   : > { %s3317_s17 = sadd.s32 1, %s3180_s27   ;;  %s32_s19 = sadd.s32 1, %s3176_s26 }
  0x39   : > { %s29_s18 = ssub.s32 %s3180_s27, %s3317_s17  ;;  %p39_p6 = scmp.ne.s32.totalorder %s3176_s26, %s3172_s25 }
  0x3a   : > { %p30_p4 = scmp.eq.s32.totalorder %s29_s18, 0  ;;  %p40_p12 = scmp.eq.s32.totalorder %s3180_s27, 0 }
  0x3b   : > { %p2553_p0 = scmp.lt.s32.totalorder %s3180_s27, 2  ;;  %p4337_p3 = scmp.eq.s32.totalorder %s3255_s28, 1 }
  0x3c   : > { %s3327_s20 = scalar_select %p30_p4, %s3176_s26, %s32_s19  }
  0x3d   : > { %p41_p5 = por %p40_p12, %p39_p6  ;;  %p3331_p10 = por %p4337_p3, %p39_p6 }
  0x3e   : > { %s269_s21 = sand.u32 1, %s3176_s26   ;;  %s2354_s22 = sshll.u32 %s3180_s27, 12 }
  0x3f   : > { %s4338_s12 = scalar_select %p3331_p10, 1, 0 }
  0x40   : > { %s2275_s16 = sshll.u32 %s269_s21, 8  ;;  %s3340_s10 = scalar_lea.hbm %s4317_s0, %s2354_s22 }
  0x41   : > { %s273_s14 = scalar_lea.vmem [#allocation2], %s2275_s16  ;;  %p3342_p11 = pnand %p2553_p0, %p41_p5 }
  0x42   : > { %s280_s15 = sshll.u32 %s273_s14, 4  ;;  %s3348_s19 = scalar_lea.sflag [#allocation3], %s269_s21  ;;  %s3346_s15 = int_to_ptr.vmem [resolvable:$true] %s280_s15 }
  0x43   : > { %s3080_s11 = scalar_lea.hbm %s3340_s10, 4096  ;;  %p3082_p1 = pneg %p3342_p11 }
  0x44   : > { %p3081_p7 = scmp.ne.s32.totalorder %s3340_s10, %s3080_s11  ;;  %s3085_s16 = scalar_lea.hbm %s4317_s0, 8192 }
  0x45   : > { %p3086_p2 = scmp.lt.s32.totalorder %s3340_s10, %s4317_s0  ;;  %p3087_p4 = scmp.lt.s32.totalorder %s3085_s16, %s3080_s11 }
  0x46   : > { %p3083_p9 = pnand %p3082_p1, %p3081_p7 }
  0x47   : > { %p3088_p6 = por %p3087_p4, %p3086_p2 }
  0x48   : > { %p3084_p13 = pneg %p3083_p9 }
  0x4a   : > { %p3089_p12 = pnand %p3088_p6, %p3084_p13 }
  0x4c   : > { %3092 = shalt.err (!%p3089_p12)
}
  0x4d   : > { %s3093_s21 = scalar_lea.vmem %s3346_s15, 4096  ;;  %s3189_s13 = smov [#allocation2]  }
  0x4e   : > { %p3094_p0 = scmp.ne.s32.totalorder %s3346_s15, %s3093_s21  ;;  %s3098_s1 = sshll.u32 %s3189_s13, 4  ;;  %s3099_s1 = int_to_ptr.vmem [resolvable:$false] %s3098_s1 }
  0x4f   : > { %s3100_s22 = scalar_lea.vmem %s3099_s1, 8192  ;;  %p3101_p7 = scmp.lt.s32.totalorder %s3346_s15, %s3099_s1 }
  0x50   : > { %p3096_p5 = pnand %p3094_p0, %p3082_p1  ;;  %p3102_p9 = scmp.lt.s32.totalorder %s3100_s22, %s3093_s21 }
  0x52   : > { %p3097_p3 = pneg %p3096_p5  ;;  %p3103_p10 = por %p3102_p9, %p3101_p7 }
  0x54   : > { %p3104_p8 = pnand %p3103_p10, %p3097_p3 }
  0x56   : > { %3107 = shalt.err (!%p3104_p8)
}
  0x57   : > { %s4340_s11 = smov 8   ;;  %s4341_s23 = smov 128  }
  0x58   : > { %2545 = dma.hbm_to_vmem [thread:$0]  (!%p3342_p11), %s3340_s10, 4096, %s3346_s15, %s3348_s19, %s4341_s23, %s4341_s23, %s4340_s11  }
  0x59   : > { %p4342_p1 = scmp.ne.s32.totalorder %s4334_s9, 0 }
  0x5a   : > { %s3375_s13 = sand.u32 (!%p4342_p1), 1, %s3172_s25   ;;  %p4343_p8 = scmp.ne.s32.totalorder (!%p4342_p1), %s4332_s30, 0 }
  0x5b   : > { %292 = sbr.rel (%p4342_p1) target bundleno = 940 (0x3ac), region = 48  ;;  %s2279_s1 = sshll.u32 (!%p4342_p1), %s3375_s13, 8 }
  0x5c   : > { %s295_s16 = scalar_lea.sflag (!%p4342_p1), [#allocation3], %s3375_s13  ;;  %s3381_s18 = scalar_lea.vmem (!%p4342_p1), [#allocation2], %s2279_s1 }
  0x60   : > { %3151 = dma.done.wait (%p4343_p8), %s295_s16, 4096  }
  0x61   : > { %3153 = vsyncadd (%p4343_p8), %s295_s16, 4294963200  ;;  %p4344_p10 = scmp.eq.s32.totalorder %s3255_s28, 0 }
  0x63   : > { %3155 = dma.done.wait (%p4344_p10), [#allocation6], 8192   ;;  %p4345_p11 = pmov %p4344_p10 }
  0x64   : > { %p4346_p13 = pmov %p4344_p10 }
  0x65   : > { %3157 = vsyncadd (%p4345_p11), [#allocation6], 4294959104 }
  0x66   : > { %3159 = dma.done.wait (%p4346_p13), [#allocation9], 2048   ;;  %p4347_p2 = pmov %p4344_p10 }
  0x67   : > { %v3190_v0 = vmov 0.0   ;;  %v406_v1 = vld [vmem:[#allocation5 + $0xf8] sm:$0xff]  ;;  %v405_v2 = vld [vmem:[#allocation5 + $0xf0] sm:$0xff]  ;;  %v404_v3 = vld [vmem:[#allocation5 + $0xe8] sm:$0xff]  ;;  %s4202_s14 = scalar_lea.vmem [#allocation10], %s2279_s1  ;;  %s2355_s21 = sshll.u32 %s3255_s28, 12 }
  0x68   : > { %3161 = vsyncadd (%p4347_p2), [#allocation9], 4294965248  ;;  %483 = vmatprep.mubr.f32.mxu0 %v3190_v0  ;;  %627 = vmatprep.mubr.f32.mxu1 %v3190_v0  ;;  %v403_v4 = vld [vmem:[#allocation5 + $0xe0] sm:$0xff]  ;;  %v402_v5 = vld [vmem:[#allocation5 + $0xd8] sm:$0xff]  ;;  %s2167_s22 = sshll.u32 %s4202_s14, 4  ;;  %s4269_s1 = scalar_lea.hbm %s4324_s7, %s2355_s21  ;;  %s4271_s22 = int_to_ptr.vmem [resolvable:$true] %s2167_s22 }
  0x69   : > { %419 = vmatprep.subr.mxu0 %v406_v1  ;;  %2484 = vmatprep.subr.mxu1 %v406_v1  ;;  %v401_v6 = vld [vmem:[#allocation5 + $0xd0] sm:$0xff]  ;;  %v400_v7 = vld [vmem:[#allocation5 + $0xc8] sm:$0xff]  ;;  %v399_v8 = vld [vmem:[#allocation5 + $0xc0] sm:$0xff]  ;;  %s2154_s28 = scalar_lea.sflag [#allocation4], %s3375_s13  ;;  %s3108_s16 = scalar_lea.vmem %s4271_s22, 4096 }
  0x6a   : > { %420 = vmatpush1.msra.mxu0 %v405_v2  ;;  %2500 = vmatpush1.msra.mxu1 %v405_v2  ;;  %v398_v9 = vld [vmem:[#allocation5 + $0xb8] sm:$0xff]  ;;  %v397_v10 = vld [vmem:[#allocation5 + $0xb0] sm:$0xff]  ;;  %v396_v11 = vld [vmem:[#allocation5 + $0xa8] sm:$0xff]  ;;  %p3109_p4 = scmp.ne.s32.totalorder %s4271_s22, %s3108_s16  ;;  %p4348_p6 = scmp.ne.s32.totalorder %s4338_s12, 0 }
  0x6b   : > { %421 = vmatprep.subr.mxu0 %v404_v3  ;;  %2485 = vmatprep.subr.mxu1 %v404_v3  ;;  %v395_v12 = vld [vmem:[#allocation5 + $0xa0] sm:$0xff]  ;;  %v394_v13 = vld [vmem:[#allocation5 + $0x98] sm:$0xff]  ;;  %v393_v14 = vld [vmem:[#allocation5 + $0x90] sm:$0xff] }
  0x6c   : > { %422 = vmatpush1.msra.mxu0 %v403_v4  ;;  %2501 = vmatpush1.msra.mxu1 %v403_v4  ;;  %v392_v15 = vld [vmem:[#allocation5 + $0x88] sm:$0xff]  ;;  %v391_v16 = vld [vmem:[#allocation5 + $0x80] sm:$0xff]  ;;  %v390_v17 = vld [vmem:[#allocation5 + $0x78] sm:$0xff]  ;;  %p3110_p12 = pnand %p3109_p4, %p4348_p6 }
  0x6d   : > { %423 = vmatprep.subr.mxu0 %v402_v5  ;;  %2486 = vmatprep.subr.mxu1 %v402_v5  ;;  %v389_v18 = vld [vmem:[#allocation5 + $0x70] sm:$0xff]  ;;  %v388_v19 = vld [vmem:[#allocation5 + $0x68] sm:$0xff]  ;;  %v387_v20 = vld [vmem:[#allocation5 + $0x60] sm:$0xff] }
  0x6e   : > { %424 = vmatpush1.msra.mxu0 %v401_v6  ;;  %2502 = vmatpush1.msra.mxu1 %v401_v6  ;;  %v386_v21 = vld [vmem:[#allocation5 + $0x58] sm:$0xff]  ;;  %v385_v22 = vld [vmem:[#allocation5 + $0x50] sm:$0xff]  ;;  %v384_v23 = vld [vmem:[#allocation5 + $0x48] sm:$0xff]  ;;  %p3111_p0 = pneg %p3110_p12 }
  0x6f   : > { %425 = vmatprep.subr.mxu0 %v400_v7  ;;  %2487 = vmatprep.subr.mxu1 %v400_v7  ;;  %v383_v24 = vld [vmem:[#allocation5 + $0x40] sm:$0xff]  ;;  %v382_v25 = vld [vmem:[#allocation5 + $0x38] sm:$0xff]  ;;  %v381_v26 = vld [vmem:[#allocation5 + $0x30] sm:$0xff] }
  0x70   : > { %426 = vmatpush1.msra.mxu0 %v399_v8  ;;  %2503 = vmatpush1.msra.mxu1 %v399_v8  ;;  %v380_v27 = vld [vmem:[#allocation5 + $0x28] sm:$0xff]  ;;  %v379_v28 = vld [vmem:[#allocation5 + $0x20] sm:$0xff]  ;;  %v378_v29 = vld [vmem:[#allocation5 + $0x18] sm:$0xff] }
  0x71   : > { %427 = vmatprep.subr.mxu0 %v398_v9  ;;  %2488 = vmatprep.subr.mxu1 %v398_v9  ;;  %v377_v30 = vld [vmem:[#allocation5 + $0x10] sm:$0xff]  ;;  %v376_v31 = vld [vmem:[#allocation5 + $0x8] sm:$0xff]  ;;  %v375_v32 = vld [vmem:[#allocation5] sm:$0xff] }
  0x72   : > { %428 = vmatpush1.msra.mxu0 %v397_v10  ;;  %2504 = vmatpush1.msra.mxu1 %v397_v10  ;;  %v3398_v33 = vld [vmem:[%s3381_s18] sm:$0xff]  ;;  %v3404_v35 = vld [vmem:[%s3381_s18 + $0x8] sm:$0xff]  ;;  %v3411_v37 = vld [vmem:[%s3381_s18 + $0x10] sm:$0xff] }
  0x73   : > { %429 = vmatprep.subr.mxu0 %v396_v11  ;;  %2489 = vmatprep.subr.mxu1 %v396_v11  ;;  %v367_v34 = vld [vmem:[%s3381_s18 + $0xc0] sm:$0xff]  ;;  %v368_v36 = vld [vmem:[%s3381_s18 + $0xc8] sm:$0xff]  ;;  %v369_v38 = vld [vmem:[%s3381_s18 + $0xd0] sm:$0xff] }
  0x74   : > { %430 = vmatpush1.msra.mxu0 %v395_v12  ;;  %2505 = vmatpush1.msra.mxu1 %v395_v12  ;;  %v3418_v39 = vld [vmem:[%s3381_s18 + $0x18] sm:$0xff]  ;;  %v3425_v41 = vld [vmem:[%s3381_s18 + $0x20] sm:$0xff]  ;;  %v3432_v43 = vld [vmem:[%s3381_s18 + $0x28] sm:$0xff] }
  0x75   : > { %431 = vmatprep.subr.mxu0 %v394_v13  ;;  %2490 = vmatprep.subr.mxu1 %v394_v13  ;;  %v370_v40 = vld [vmem:[%s3381_s18 + $0xd8] sm:$0xff]  ;;  %v371_v42 = vld [vmem:[%s3381_s18 + $0xe0] sm:$0xff]  ;;  %v372_v44 = vld [vmem:[%s3381_s18 + $0xe8] sm:$0xff] }
  0x76   : > { %432 = vmatpush1.msra.mxu0 %v393_v14  ;;  %2506 = vmatpush1.msra.mxu1 %v393_v14  ;;  %v3439_v45 = vld [vmem:[%s3381_s18 + $0x30] sm:$0xff]  ;;  %v3446_v47 = vld [vmem:[%s3381_s18 + $0x38] sm:$0xff]  ;;  %v3453_v49 = vld [vmem:[%s3381_s18 + $0x40] sm:$0xff] }
  0x77   : > { %433 = vmatprep.subr.mxu0 %v392_v15  ;;  %2491 = vmatprep.subr.mxu1 %v392_v15  ;;  %v373_v46 = vld [vmem:[%s3381_s18 + $0xf0] sm:$0xff]  ;;  %v374_v48 = vld [vmem:[%s3381_s18 + $0xf8] sm:$0xff]  ;;  %v3459_v50 = vld [vmem:[%s3381_s18 + $0x48] sm:$0xff] }
  0x78   : > { %434 = vmatpush1.msra.mxu0 %v391_v16  ;;  %2507 = vmatpush1.msra.mxu1 %v391_v16  ;;  %v3464_v51 = vld [vmem:[%s3381_s18 + $0x50] sm:$0xff]  ;;  %v3469_v52 = vld [vmem:[%s3381_s18 + $0x58] sm:$0xff]  ;;  %v3474_v53 = vld [vmem:[%s3381_s18 + $0x60] sm:$0xff] }
  0x79   : > { %435 = vmatprep.subr.mxu0 %v390_v17  ;;  %2492 = vmatprep.subr.mxu1 %v390_v17  ;;  %v3479_v54 = vld [vmem:[%s3381_s18 + $0x68] sm:$0xff]  ;;  %v3484_v55 = vld [vmem:[%s3381_s18 + $0x70] sm:$0xff]  ;;  %v3489_v56 = vld [vmem:[%s3381_s18 + $0x78] sm:$0xff] }
  0x7a   : > { %436 = vmatpush1.msra.mxu0 %v389_v18  ;;  %2508 = vmatpush1.msra.mxu1 %v389_v18  ;;  %v359_v57 = vld [vmem:[%s3381_s18 + $0x80] sm:$0xff]  ;;  %v360_v58 = vld [vmem:[%s3381_s18 + $0x88] sm:$0xff]  ;;  %v361_v59 = vld [vmem:[%s3381_s18 + $0x90] sm:$0xff] }
  0x7b   : > { %437 = vmatprep.subr.mxu0 %v388_v19  ;;  %2493 = vmatprep.subr.mxu1 %v388_v19  ;;  %v1155_v60 = vld [vmem:[#allocation7 + $0xf8] sm:$0xff]  ;;  %v1154_v62 = vld [vmem:[#allocation7 + $0xf0] sm:$0xff]  ;;  %v1153_v63 = vld [vmem:[#allocation7 + $0xe8] sm:$0xff] }
  0x7c   : > { %438 = vmatpush1.msra.mxu0 %v387_v20  ;;  %2509 = vmatpush1.msra.mxu1 %v387_v20  ;;  %v362_v61 = vld [vmem:[%s3381_s18 + $0x98] sm:$0xff]  ;;  %v1152_v1 = vld [vmem:[#allocation7 + $0xe0] sm:$0xff]  ;;  %v1150_v4 = vld [vmem:[#allocation7 + $0xd0] sm:$0xff] }
  0x7d   : > { %439 = vmatprep.subr.mxu0 %v386_v21  ;;  %2494 = vmatprep.subr.mxu1 %v386_v21  ;;  %v1151_v2 = vld [vmem:[#allocation7 + $0xd8] sm:$0xff]  ;;  %v363_v3 = vld [vmem:[%s3381_s18 + $0xa0] sm:$0xff]  ;;  %v1149_v5 = vld [vmem:[#allocation7 + $0xc8] sm:$0xff] }
  0x7e   : > { %440 = vmatpush1.msra.mxu0 %v385_v22  ;;  %2510 = vmatpush1.msra.mxu1 %v385_v22  ;;  %v1148_v6 = vld [vmem:[#allocation7 + $0xc0] sm:$0xff]  ;;  %v1147_v7 = vld [vmem:[#allocation7 + $0xb8] sm:$0xff]  ;;  %v364_v8 = vld [vmem:[%s3381_s18 + $0xa8] sm:$0xff] }
  0x7f   : > { %441 = vmatprep.subr.mxu0 %v384_v23  ;;  %2495 = vmatprep.subr.mxu1 %v384_v23  ;;  %v1146_v9 = vld [vmem:[#allocation7 + $0xb0] sm:$0xff]  ;;  %v1145_v10 = vld [vmem:[#allocation7 + $0xa8] sm:$0xff]  ;;  %v1144_v11 = vld [vmem:[#allocation7 + $0xa0] sm:$0xff] }
  0x80   : > { %442 = vmatpush1.msra.mxu0 %v383_v24  ;;  %2511 = vmatpush1.msra.mxu1 %v383_v24  ;;  %v365_v12 = vld [vmem:[%s3381_s18 + $0xb0] sm:$0xff]  ;;  %v1143_v13 = vld [vmem:[#allocation7 + $0x98] sm:$0xff]  ;;  %v1141_v15 = vld [vmem:[#allocation7 + $0x88] sm:$0xff] }
  0x81   : > { %443 = vmatprep.subr.mxu0 %v382_v25  ;;  %2496 = vmatprep.subr.mxu1 %v382_v25  ;;  %v1142_v14 = vld [vmem:[#allocation7 + $0x90] sm:$0xff]  ;;  %v1140_v16 = vld [vmem:[#allocation7 + $0x80] sm:$0xff]  ;;  %v366_v17 = vld [vmem:[%s3381_s18 + $0xb8] sm:$0xff] }
  0x82   : > { %444 = vmatpush1.msra.mxu0 %v381_v26  ;;  %2512 = vmatpush1.msra.mxu1 %v381_v26  ;;  %v1139_v18 = vld [vmem:[#allocation7 + $0x78] sm:$0xff]  ;;  %v1138_v19 = vld [vmem:[#allocation7 + $0x70] sm:$0xff]  ;;  %v1137_v20 = vld [vmem:[#allocation7 + $0x68] sm:$0xff] }
  0x83   : > { %445 = vmatprep.subr.mxu0 %v380_v27  ;;  %2497 = vmatprep.subr.mxu1 %v380_v27  ;;  %v1136_v21 = vld [vmem:[#allocation7 + $0x60] sm:$0xff]  ;;  %v1135_v22 = vld [vmem:[#allocation7 + $0x58] sm:$0xff]  ;;  %v1134_v23 = vld [vmem:[#allocation7 + $0x50] sm:$0xff] }
  0x84   : > { %446 = vmatpush1.msra.mxu0 %v379_v28  ;;  %2513 = vmatpush1.msra.mxu1 %v379_v28  ;;  %v1133_v24 = vld [vmem:[#allocation7 + $0x48] sm:$0xff]  ;;  %v1132_v25 = vld [vmem:[#allocation7 + $0x40] sm:$0xff]  ;;  %v1131_v26 = vld [vmem:[#allocation7 + $0x38] sm:$0xff] }
  0x85   : > { %447 = vmatprep.subr.mxu0 %v378_v29  ;;  %2498 = vmatprep.subr.mxu1 %v378_v29  ;;  %v1130_v27 = vld [vmem:[#allocation7 + $0x30] sm:$0xff]  ;;  %v1129_v28 = vld [vmem:[#allocation7 + $0x28] sm:$0xff]  ;;  %v1128_v29 = vld [vmem:[#allocation7 + $0x20] sm:$0xff] }
  0x86   : > { %448 = vmatpush1.msra.mxu0 %v377_v30  ;;  %2514 = vmatpush1.msra.mxu1 %v377_v30  ;;  %v1127_v30 = vld [vmem:[#allocation7 + $0x18] sm:$0xff] }
  0x87   : > { %449 = vmatprep.subr.mxu0 %v376_v31  ;;  %2499 = vmatprep.subr.mxu1 %v376_v31  ;;  %v1126_v31 = vld [vmem:[#allocation7 + $0x10] sm:$0xff] }
  0x88   : > { %450 = vmatpush1.msra.mxu0 %v375_v32  ;;  %2515 = vmatpush1.msra.mxu1 %v375_v32  ;;  %v1125_v32 = vld [vmem:[#allocation7 + $0x8] sm:$0xff] }
  0x89   : > { %484 = vmatmul.mubr.f32.vlgmr.msra.gmra.mxu0 %v3398_v33  ;;  %628 = vmatmul.mubr.f32.vlgmr.msra.gmra.mxu1 %v367_v34  ;;  %v1124_v34 = vld [vmem:[#allocation7] sm:$0xff] }
  0x8a   : > { %489 = vmatprep.mubr.f32.mxu0 %v3190_v0  ;;  %633 = vmatprep.mubr.f32.mxu1 %v3190_v0 }
  0x8b   : > { %1168 = vmatprep.subr.mxu1 %v1155_v60 }
  0x8c   : > { %1169 = vmatpush1.msra.mxu1 %v1154_v62 }
  0x8d   : > { %490 = vmatmul.mubr.f32.gmra.mxu0 %v3404_v35  ;;  %634 = vmatmul.mubr.f32.gmra.mxu1 %v368_v36  ;;  %v409_v36 = vlaneseq }
  0x8e   : > { %495 = vmatprep.mubr.f32.mxu0 %v3190_v0  ;;  %639 = vmatprep.mubr.f32.mxu1 %v3190_v0 }
  0x8f   : > { %1170 = vmatprep.subr.mxu1 %v1153_v63 }
  0x90   : > { %1171 = vmatpush1.msra.mxu1 %v1152_v1 }
  0x91   : > { %496 = vmatmul.mubr.f32.gmra.mxu0 %v3411_v37  ;;  %640 = vmatmul.mubr.f32.gmra.mxu1 %v369_v38  ;;  %v3508_v38 = vshrl.u32 %v409_v36, 7 }
  0x92   : > { %501 = vmatprep.mubr.f32.mxu0 %v3190_v0  ;;  %645 = vmatprep.mubr.f32.mxu1 %v3190_v0 }
  0x93   : > { %1172 = vmatprep.subr.mxu1 %v1151_v2 }
  0x94   : > { %1173 = vmatpush1.msra.mxu1 %v1150_v4 }
  0x95   : > { %502 = vmatmul.mubr.f32.gmra.mxu0 %v3418_v39  ;;  %646 = vmatmul.mubr.f32.gmra.mxu1 %v370_v40  ;;  %v411_v40 = vsub.s32 0, %v3508_v38 }
  0x96   : > { %507 = vmatprep.mubr.f32.mxu0 %v3190_v0  ;;  %651 = vmatprep.mubr.f32.mxu1 %v3190_v0 }
  0x97   : > { %1174 = vmatprep.subr.mxu1 %v1149_v5 }
  0x98   : > { %1175 = vmatpush1.msra.mxu1 %v1148_v6 }
  0x99   : > { %508 = vmatmul.mubr.f32.gmra.mxu0 %v3425_v41  ;;  %652 = vmatmul.mubr.f32.gmra.mxu1 %v371_v42  ;;  %v407_v42 = vld [vmem:[%s4319_s2] sm:$0x3] }
  0x9a   : > { %513 = vmatprep.mubr.f32.mxu0 %v3190_v0  ;;  %657 = vmatprep.mubr.f32.mxu1 %v3190_v0 }
  0x9b   : > { %1176 = vmatprep.subr.mxu1 %v1147_v7 }
  0x9c   : > { %1177 = vmatpush1.msra.mxu1 %v1146_v9 }
  0x9d   : > { %514 = vmatmul.mubr.f32.gmra.mxu0 %v3432_v43  ;;  %658 = vmatmul.mubr.f32.gmra.mxu1 %v372_v44  ;;  %v415_v44 = vsub.s32 1, %v3508_v38 }
  0x9e   : > { %519 = vmatprep.mubr.f32.mxu0 %v3190_v0  ;;  %663 = vmatprep.mubr.f32.mxu1 %v3190_v0 }
  0x9f   : > { %1178 = vmatprep.subr.mxu1 %v1145_v10 }
  0xa0   : > { %1179 = vmatpush1.msra.mxu1 %v1144_v11 }
  0xa1   : > { %520 = vmatmul.mubr.f32.gmra.mxu0 %v3439_v45  ;;  %664 = vmatmul.mubr.f32.gmra.mxu1 %v373_v46  ;;  %v3517_v46 = vrot.slane %v407_v42, %v411_v40 }
  0xa2   : > { %525 = vmatprep.mubr.f32.mxu0 %v3190_v0  ;;  %669 = vmatprep.mubr.f32.mxu1 %v3190_v0 }
  0xa3   : > { %1180 = vmatprep.subr.mxu1 %v1143_v13 }
  0xa4   : > { %1181 = vmatpush1.msra.mxu1 %v1142_v14 }
  0xa5   : > { %526 = vmatmul.mubr.f32.gmra.mxu0 %v3446_v47  ;;  %670 = vmatmul.mubr.f32.gmra.mxu1 %v374_v48  ;;  %v3521_v48 = vrot.slane %v407_v42, %v415_v44 }
  0xa6   : > { %531 = vmatprep.mubr.f32.mxu0 %v3190_v0  ;;  %1232 = vmatprep.mubr.f32.mxu1 %v3190_v0 }
  0xa7   : > { %1182 = vmatprep.subr.mxu1 %v1141_v15 }
  0xa8   : > { %1183 = vmatpush1.msra.mxu1 %v1140_v16 }
  0xa9   : > { %532 = vmatmul.mubr.f32.gmra.mxu0 %v3453_v49  ;;  %1184 = vmatprep.subr.mxu1 %v1139_v18 }
  0xaa   : > { %537 = vmatprep.mubr.f32.mxu0 %v3190_v0  ;;  %1185 = vmatpush1.msra.mxu1 %v1138_v19 }
  0xab   : > { %1186 = vmatprep.subr.mxu1 %v1137_v20 }
  0xac   : > { %1187 = vmatpush1.msra.mxu1 %v1136_v21 }
  0xad   : > { %538 = vmatmul.mubr.f32.gmra.mxu0 %v3459_v50  ;;  %1188 = vmatprep.subr.mxu1 %v1135_v22 }
  0xae   : > { %543 = vmatprep.mubr.f32.mxu0 %v3190_v0  ;;  %1189 = vmatpush1.msra.mxu1 %v1134_v23 }
  0xaf   : > { %1190 = vmatprep.subr.mxu1 %v1133_v24 }
  0xb0   : > { %1191 = vmatpush1.msra.mxu1 %v1132_v25 }
  0xb1   : > { %544 = vmatmul.mubr.f32.gmra.mxu0 %v3464_v51  ;;  %1192 = vmatprep.subr.mxu1 %v1131_v26 }
  0xb2   : > { %549 = vmatprep.mubr.f32.mxu0 %v3190_v0  ;;  %1193 = vmatpush1.msra.mxu1 %v1130_v27 }
  0xb3   : > { %1194 = vmatprep.subr.mxu1 %v1129_v28 }
  0xb4   : > { %1195 = vmatpush1.msra.mxu1 %v1128_v29 }
  0xb5   : > { %550 = vmatmul.mubr.f32.gmra.mxu0 %v3469_v52  ;;  %1196 = vmatprep.subr.mxu1 %v1127_v30 }
  0xb6   : > { %555 = vmatprep.mubr.f32.mxu0 %v3190_v0  ;;  %1197 = vmatpush1.msra.mxu1 %v1126_v31 }
  0xb7   : > { %1198 = vmatprep.subr.mxu1 %v1125_v32 }
  0xb8   : > { %1199 = vmatpush1.msra.mxu1 %v1124_v34 }
  0xb9   : > { %556 = vmatmul.mubr.f32.gmra.mxu0 %v3474_v53 }
  0xba   : > { %561 = vmatprep.mubr.f32.mxu0 %v3190_v0 }
  0xbd   : > { %562 = vmatmul.mubr.f32.gmra.mxu0 %v3479_v54 }
  0xbe   : > { %567 = vmatprep.mubr.f32.mxu0 %v3190_v0 }
  0xc1   : > { %568 = vmatmul.mubr.f32.gmra.mxu0 %v3484_v55 }
  0xc2   : > { %573 = vmatprep.mubr.f32.mxu0 %v3190_v0 }
  0xc5   : > { %574 = vmatmul.mubr.f32.gmra.mxu0 %v3489_v56 }
  0xc6   : > { %579 = vmatprep.mubr.f32.mxu0 %v3190_v0 }
  0xc9   : > { %580 = vmatmul.mubr.f32.gmra.mxu0 %v359_v57 }
  0xca   : > { %585 = vmatprep.mubr.f32.mxu0 %v3190_v0 }
  0xcd   : > { %586 = vmatmul.mubr.f32.gmra.mxu0 %v360_v58 }
  0xce   : > { %591 = vmatprep.mubr.f32.mxu0 %v3190_v0 }
  0xd1   : > { %592 = vmatmul.mubr.f32.gmra.mxu0 %v361_v59 }
  0xd2   : > { %597 = vmatprep.mubr.f32.mxu0 %v3190_v0 }
  0xd5   : > { %598 = vmatmul.mubr.f32.gmra.mxu0 %v362_v61 }
  0xd6   : > { %603 = vmatprep.mubr.f32.mxu0 %v3190_v0 }
  0xd9   : > { %604 = vmatmul.mubr.f32.gmra.mxu0 %v363_v3 }
  0xda   : > { %609 = vmatprep.mubr.f32.mxu0 %v3190_v0 }
  0xdd   : > { %610 = vmatmul.mubr.f32.gmra.mxu0 %v364_v8 }
  0xde   : > { %615 = vmatprep.mubr.f32.mxu0 %v3190_v0 }
  0xe1   : > { %616 = vmatmul.mubr.f32.gmra.mxu0 %v365_v12 }
  0xe2   : > { %621 = vmatprep.mubr.f32.mxu0 %v3190_v0 }
  0xe5   : > { %622 = vmatmul.mubr.f32.gmra.mxu0 %v366_v17 }
 0x149   : > { %v485_v57 = vpop.f32.mrf.mxu0 }
 0x14a   : > { %v486_v58 = vadd.f32 %v485_v57, %v3517_v46 }
 0x14b   : > { %v487_v59 = vpop.f32.mrf.mxu0 }
 0x14c   : > { %v488_v60 = vadd.f32 %v487_v59, %v3521_v48  ;;  %v708_v63 = vmul.f32 0.70710677, %v486_v58 }
 0x14d   : > { %v491_v61 = vpop.f32.mrf.mxu0 }
 0x14e   : > { %v2284_v62 = vmul.f32 -1.442695, %v488_v60  ;;  %v3526_v1 = vadd.f32 %v491_v61, %v3517_v46 }
 0x14f   : > { %v493_v2 = vpop.f32.mrf.mxu0 }
 0x150   : > { %2600 = vpow2.f32 %v2284_v62  ;;  %v494_v3 = vadd.f32 %v493_v2, %v3521_v48  ;;  %v709_v6 = vmul.f32 0.70710677, %v3526_v1 }
 0x151   : > { %v497_v4 = vpop.f32.mrf.mxu0  ;;  %2602 = verf.f32 %v708_v63 }
 0x152   : > { %v2285_v5 = vmul.f32 -1.442695, %v494_v3  ;;  %v3531_v7 = vadd.f32 %v497_v4, %v3517_v46  ;;  %v676_v3 = vmul.f32 0.5, %v486_v58 }
 0x153   : > { %v499_v8 = vpop.f32.mrf.mxu0 }
 0x154   : > { %2604 = vpow2.f32 %v2285_v5  ;;  %v500_v9 = vadd.f32 %v499_v8, %v3521_v48  ;;  %v710_v12 = vmul.f32 0.70710677, %v3531_v7 }
 0x155   : > { %v503_v10 = vpop.f32.mrf.mxu0  ;;  %2606 = verf.f32 %v709_v6 }
 0x156   : > { %v2286_v11 = vmul.f32 -1.442695, %v500_v9  ;;  %v3536_v13 = vadd.f32 %v503_v10, %v3517_v46 }
 0x157   : > { %v505_v14 = vpop.f32.mrf.mxu0 }
 0x158   : > { %2608 = vpow2.f32 %v2286_v11  ;;  %v506_v15 = vadd.f32 %v505_v14, %v3521_v48  ;;  %v711_v18 = vmul.f32 0.70710677, %v3536_v13 }
 0x159   : > { %v509_v16 = vpop.f32.mrf.mxu0  ;;  %2610 = verf.f32 %v710_v12 }
 0x15a   : > { %v2287_v17 = vmul.f32 -1.442695, %v506_v15  ;;  %v3541_v19 = vadd.f32 %v509_v16, %v3517_v46  ;;  %v677_v15 = vmul.f32 0.5, %v3526_v1 }
 0x15b   : > { %v511_v20 = vpop.f32.mrf.mxu0 }
 0x15c   : > { %2612 = vpow2.f32 %v2287_v17  ;;  %v512_v22 = vadd.f32 %v511_v20, %v3521_v48  ;;  %v712_v25 = vmul.f32 0.70710677, %v3541_v19 }
 0x15d   : > { %v2601_v21 = vpop.eup %2600  ;;  %v515_v23 = vpop.f32.mrf.mxu0  ;;  %2614 = verf.f32 %v711_v18 }
 0x15e   : > { %v932_v24 = vadd.f32 1.0, %v2601_v21  ;;  %v2288_v26 = vmul.f32 -1.442695, %v512_v22  ;;  %v3546_v27 = vadd.f32 %v515_v23, %v3517_v46  ;;  %v2603_v29 = vpop.eup %2602 }
 0x15f   : > { %v517_v28 = vpop.f32.mrf.mxu0  ;;  %v772_v61 = vadd.f32 1.0, %v2603_v29 }
 0x160   : > { %2616 = vrcp.f32 %v932_v24  ;;  %v518_v31 = vadd.f32 %v517_v28, %v3521_v48  ;;  %v713_v36 = vmul.f32 0.70710677, %v3546_v27 }
 0x161   : > { %v2605_v30 = vpop.eup %2604  ;;  %2618 = vpow2.f32 %v2288_v26  ;;  %v521_v32 = vpop.f32.mrf.mxu0  ;;  %v804_v11 = vmul.f32 %v772_v61, %v676_v3 }
 0x162   : > { %v933_v34 = vadd.f32 1.0, %v2605_v30  ;;  %2620 = verf.f32 %v712_v25  ;;  %v2289_v42 = vmul.f32 -1.442695, %v518_v31  ;;  %v3551_v57 = vadd.f32 %v521_v32, %v3517_v46  ;;  %v2607_v60 = vpop.eup %2606 }
 0x163   : > { %v523_v59 = vpop.f32.mrf.mxu0  ;;  %v773_v5 = vadd.f32 1.0, %v2607_v60  ;;  %v1028_v23 = vsub.f32 %v804_v11, %v3398_v33  ;;  %v678_v30 = vmul.f32 0.5, %v3531_v7  ;;  %v679_v7 = vmul.f32 0.5, %v3536_v13 }
 0x164   : > { %2622 = vrcp.f32 %v933_v34  ;;  %v524_v63 = vadd.f32 %v523_v59, %v3521_v48  ;;  %v714_v6 = vmul.f32 0.70710677, %v3551_v57 }
 0x165   : > { %v2609_v62 = vpop.eup %2608  ;;  %2624 = vpow2.f32 %v2289_v42  ;;  %v527_v2 = vpop.f32.mrf.mxu0  ;;  %v805_v18 = vmul.f32 %v773_v5, %v677_v15 }
 0x166   : > { %v934_v4 = vadd.f32 1.0, %v2609_v62  ;;  %2626 = verf.f32 %v713_v36  ;;  %v2290_v8 = vmul.f32 -1.442695, %v524_v63  ;;  %v2611_v10 = vpop.eup %2610  ;;  %v3556_v12 = vadd.f32 %v527_v2, %v3517_v46 }
 0x167   : > { %v529_v9 = vpop.f32.mrf.mxu0  ;;  %v774_v24 = vadd.f32 1.0, %v2611_v10  ;;  %v1029_v34 = vsub.f32 %v805_v18, %v3404_v35 }
 0x168   : > { %2628 = vrcp.f32 %v934_v4  ;;  %v530_v16 = vadd.f32 %v529_v9, %v3521_v48  ;;  %v715_v25 = vmul.f32 0.70710677, %v3556_v12 }
 0x169   : > { %v2613_v14 = vpop.eup %2612  ;;  %2630 = vpow2.f32 %v2290_v8  ;;  %v533_v58 = vpop.f32.mrf.mxu0  ;;  %v806_v62 = vmul.f32 %v774_v24, %v678_v30  ;;  %v680_v24 = vmul.f32 0.5, %v3541_v19 }
 0x16a   : > { %v935_v17 = vadd.f32 1.0, %v2613_v14  ;;  %2632 = verf.f32 %v714_v6  ;;  %v2291_v20 = vmul.f32 -1.442695, %v530_v16  ;;  %v2615_v22 = vpop.eup %2614  ;;  %v3565_v31 = vadd.f32 %v533_v58, %v3517_v46 }
 0x16b   : > { %v535_v21 = vpop.f32.mrf.mxu0  ;;  %v775_v63 = vadd.f32 1.0, %v2615_v22  ;;  %v1030_v58 = vsub.f32 %v806_v62, %v3411_v37 }
 0x16c   : > { %2634 = vrcp.f32 %v935_v17  ;;  %v536_v1 = vadd.f32 %v535_v21, %v3521_v48  ;;  %v716_v8 = vmul.f32 0.70710677, %v3565_v31 }
 0x16d   : > { %v2617_v26 = vpop.eup %2616  ;;  %2636 = vpow2.f32 %v2291_v20  ;;  %v539_v28 = vpop.f32.mrf.mxu0 }
 0x16e   : > { %v2619_v29 = vpop.eup %2618  ;;  %v1060_v32 = vmul.f32 %v2617_v26, %v1028_v23  ;;  %v2292_v42 = vmul.f32 -1.442695, %v536_v1  ;;  %v3569_v59 = vadd.f32 %v539_v28, %v3517_v46  ;;  %2638 = verf.f32 %v715_v25 }
 0x16f   : > { %v936_v36 = vadd.f32 1.0, %v2619_v29  ;;  %v541_v60 = vpop.f32.mrf.mxu0  ;;  %v2621_v61 = vpop.eup %2620 }
 0x170   : > { %v542_v2 = vadd.f32 %v541_v60, %v3521_v48  ;;  %v3574_v5 = vadd.f32 %v1060_v32, %v3398_v33  ;;  %v717_v14 = vmul.f32 0.70710677, %v3569_v59  ;;  %v807_v33 = vmul.f32 %v775_v63, %v679_v7 }
 0x171   : > { %v2623_v3 = vpop.eup %2622  ;;  %2640 = vrcp.f32 %v936_v36  ;;  %v545_v4 = vpop.f32.mrf.mxu0  ;;  %v776_v20 = vadd.f32 1.0, %v2621_v61  ;;  %v681_v63 = vmul.f32 0.5, %v3546_v27 }
 0x172   : > { %v2625_v6 = vpop.eup %2624  ;;  %2642 = vpow2.f32 %v2292_v42  ;;  %v2293_v9 = vmul.f32 -1.442695, %v542_v2  ;;  %v1061_v10 = vmul.f32 %v2623_v3, %v1029_v34  ;;  %v3579_v15 = vadd.f32 %v545_v4, %v3517_v46  ;;  %1233 = vmatmul.mubr.f32.vlgmr.msra.gmra.mxu1 %v3574_v5 }
 0x173   : > { %v937_v11 = vadd.f32 1.0, %v2625_v6  ;;  %v547_v13 = vpop.f32.mrf.mxu0  ;;  %v2627_v16 = vpop.eup %2626  ;;  %1238 = vmatprep.mubr.f32.mxu1 %v3190_v0  ;;  %v808_v36 = vmul.f32 %v776_v20, %v680_v24 }
 0x174   : > { %2644 = vpow2.f32 %v2293_v9  ;;  %v548_v17 = vadd.f32 %v547_v13, %v3521_v48  ;;  %v3586_v22 = vadd.f32 %v1061_v10, %v3404_v35  ;;  %v718_v28 = vmul.f32 0.70710677, %v3579_v15 }
 0x175   : > { %v2629_v18 = vpop.eup %2628  ;;  %2646 = vrcp.f32 %v937_v11  ;;  %v551_v21 = vpop.f32.mrf.mxu0  ;;  %v1031_v35 = vsub.f32 %v807_v33, %v3418_v39  ;;  %v777_v42 = vadd.f32 1.0, %v2627_v16  ;;  %v1032_v27 = vsub.f32 %v808_v36, %v3425_v41 }
 0x176   : > { %v2631_v23 = vpop.eup %2630  ;;  %2648 = verf.f32 %v716_v8  ;;  %v2294_v25 = vmul.f32 -1.442695, %v548_v17  ;;  %v1062_v26 = vmul.f32 %v2629_v18, %v1030_v58  ;;  %v3591_v29 = vadd.f32 %v551_v21, %v3517_v46  ;;  %1239 = vmatmul.mubr.f32.gmra.mxu1 %v3586_v22 }
 0x177   : > { %v938_v1 = vadd.f32 1.0, %v2631_v23  ;;  %2650 = verf.f32 %v717_v14  ;;  %v553_v30 = vpop.f32.mrf.mxu0  ;;  %v2633_v32 = vpop.eup %2632  ;;  %1244 = vmatprep.mubr.f32.mxu1 %v3190_v0  ;;  %v809_v11 = vmul.f32 %v777_v42, %v681_v63  ;;  %v682_v58 = vmul.f32 0.5, %v3551_v57 }
 0x178   : > { %2652 = vpow2.f32 %v2294_v25  ;;  %v554_v34 = vadd.f32 %v553_v30, %v3521_v48  ;;  %v3598_v61 = vadd.f32 %v1062_v26, %v3411_v37  ;;  %v719_v4 = vmul.f32 0.70710677, %v3591_v29 }
 0x179   : > { %v2635_v19 = vpop.eup %2634  ;;  %2654 = vrcp.f32 %v938_v1  ;;  %v557_v60 = vpop.f32.mrf.mxu0  ;;  %v778_v9 = vadd.f32 1.0, %v2633_v32  ;;  %v1033_v26 = vsub.f32 %v809_v11, %v3432_v43 }
 0x17a   : > { %v2637_v62 = vpop.eup %2636  ;;  %v2295_v2 = vmul.f32 -1.442695, %v554_v34  ;;  %v1063_v3 = vmul.f32 %v2635_v19, %v1031_v35  ;;  %2656 = verf.f32 %v718_v28  ;;  %v3603_v6 = vadd.f32 %v557_v60, %v3517_v46  ;;  %1245 = vmatmul.mubr.f32.gmra.mxu1 %v3598_v61 }
 0x17b   : > { %v939_v7 = vadd.f32 1.0, %v2637_v62  ;;  %v559_v8 = vpop.f32.mrf.mxu0  ;;  %1250 = vmatprep.mubr.f32.mxu1 %v3190_v0  ;;  %v2639_v10 = vpop.eup %2638  ;;  %v810_v24 = vmul.f32 %v778_v9, %v682_v58  ;;  %v683_v34 = vmul.f32 0.5, %v3556_v12 }
 0x17c   : > { %2658 = vpow2.f32 %v2295_v2  ;;  %v560_v37 = vadd.f32 %v559_v8, %v3521_v48  ;;  %v3610_v13 = vadd.f32 %v1063_v3, %v3418_v39  ;;  %v720_v20 = vmul.f32 0.70710677, %v3603_v6  ;;  %v3619_v39 = vpop.f32.mrf.mxu1 }
 0x17d   : > { %2660 = vrcp.f32 %v939_v7  ;;  %v563_v14 = vpop.f32.mrf.mxu0  ;;  %v779_v1 = vadd.f32 1.0, %v2639_v10 }
 0x17e   : > { %v2641_v16 = vpop.eup %2640  ;;  %v2296_v33 = vmul.f32 -1.442695, %v560_v37  ;;  %v3614_v17 = vadd.f32 %v563_v14, %v3517_v46  ;;  %2662 = verf.f32 %v719_v4  ;;  %1251 = vmatmul.mubr.f32.gmra.mxu1 %v3610_v13  ;;  %v3634_v12 = vpop.f32.mrf.mxu1 }
 0x17f   : > { %v2643_v18 = vpop.eup %2642  ;;  %v565_v21 = vpop.f32.mrf.mxu0  ;;  %v1064_v23 = vmul.f32 %v2641_v16, %v1032_v27  ;;  %1256 = vmatprep.mubr.f32.mxu1 %v3190_v0  ;;  %v811_v4 = vmul.f32 %v779_v1, %v683_v34 }
 0x180   : > { %v940_v25 = vadd.f32 1.0, %v2643_v18  ;;  %2664 = vpow2.f32 %v2296_v33  ;;  %v566_v28 = vadd.f32 %v565_v21, %v3521_v48  ;;  %v721_v36 = vmul.f32 0.70710677, %v3614_v17 }
 0x181   : > { %v2645_v57 = vpop.eup %2644  ;;  %v569_v30 = vpop.f32.mrf.mxu0  ;;  %v3624_v32 = vadd.f32 %v1064_v23, %v3425_v41  ;;  %v1034_v41 = vsub.f32 %v810_v24, %v3439_v45  ;;  %v684_v21 = vmul.f32 0.5, %v3565_v31  ;;  %v685_v31 = vmul.f32 0.5, %v3569_v59 }
 0x182   : > { %v2647_v35 = vpop.eup %2646  ;;  %2666 = vrcp.f32 %v940_v25  ;;  %v941_v19 = vadd.f32 1.0, %v2645_v57  ;;  %v2297_v60 = vmul.f32 -1.442695, %v566_v28  ;;  %v3629_v62 = vadd.f32 %v569_v30, %v3517_v46 }
 0x183   : > { %v2649_v42 = vpop.eup %2648  ;;  %2668 = verf.f32 %v720_v20  ;;  %1257 = vmatmul.mubr.f32.gmra.mxu1 %v3624_v32  ;;  %v571_v63 = vpop.f32.mrf.mxu0  ;;  %v1065_v2 = vmul.f32 %v2647_v35, %v1033_v26  ;;  %v1035_v25 = vsub.f32 %v811_v4, %v3446_v47 }
 0x184   : > { %v2651_v3 = vpop.eup %2650  ;;  %2670 = vrcp.f32 %v941_v19  ;;  %1262 = vmatprep.mubr.f32.mxu1 %v3190_v0  ;;  %v572_v8 = vadd.f32 %v571_v63, %v3521_v48  ;;  %v780_v27 = vadd.f32 1.0, %v2649_v42  ;;  %v722_v14 = vmul.f32 0.70710677, %v3629_v62 }
 0x185   : > { %v2653_v7 = vpop.eup %2652  ;;  %2672 = vpow2.f32 %v2297_v60  ;;  %v575_v9 = vpop.f32.mrf.mxu0  ;;  %v3638_v37 = vadd.f32 %v1065_v2, %v3432_v43  ;;  %v781_v23 = vadd.f32 1.0, %v2651_v3 }
 0x186   : > { %v2655_v10 = vpop.eup %2654  ;;  %v942_v11 = vadd.f32 1.0, %v2653_v7  ;;  %2674 = verf.f32 %v721_v36  ;;  %v2298_v16 = vmul.f32 -1.442695, %v572_v8  ;;  %v3642_v58 = vadd.f32 %v575_v9, %v3517_v46  ;;  %v3647_v43 = vpop.f32.mrf.mxu1 }
 0x187   : > { %1263 = vmatmul.mubr.f32.gmra.mxu1 %v3638_v37  ;;  %v577_v33 = vpop.f32.mrf.mxu0  ;;  %v1066_v18 = vmul.f32 %v2655_v10, %v1034_v41  ;;  %v2657_v20 = vpop.eup %2656  ;;  %v812_v30 = vmul.f32 %v780_v27, %v684_v21  ;;  %v813_v63 = vmul.f32 %v781_v23, %v685_v31  ;;  %v686_v8 = vmul.f32 0.5, %v3579_v15 }
 0x188   : > { %2676 = vrcp.f32 %v942_v11  ;;  %1268 = vmatprep.mubr.f32.mxu1 %v3190_v0  ;;  %v578_v57 = vadd.f32 %v577_v33, %v3521_v48  ;;  %v723_v34 = vmul.f32 0.70710677, %v3642_v58  ;;  %v782_v3 = vadd.f32 1.0, %v2657_v20 }
 0x189   : > { %v2659_v24 = vpop.eup %2658  ;;  %2678 = vpow2.f32 %v2298_v16  ;;  %v581_v26 = vpop.f32.mrf.mxu0  ;;  %v3652_v1 = vadd.f32 %v1066_v18, %v3439_v45  ;;  %v3670_v10 = vadd.f32 %v3619_v39, %v3517_v46  ;;  %v1036_v11 = vsub.f32 %v812_v30, %v3453_v49 }
 0x18a   : > { %v2661_v28 = vpop.eup %2660  ;;  %v943_v35 = vadd.f32 1.0, %v2659_v24  ;;  %2680 = verf.f32 %v722_v14  ;;  %v2299_v19 = vmul.f32 -1.442695, %v578_v57  ;;  %v3658_v2 = vadd.f32 %v581_v26, %v3517_v46  ;;  %v3661_v45 = vpop.f32.mrf.mxu1 }
 0x18b   : > { %1269 = vmatmul.mubr.f32.gmra.mxu1 %v3652_v1  ;;  %v583_v36 = vpop.f32.mrf.mxu0  ;;  %v1067_v42 = vmul.f32 %v2661_v28, %v1035_v25  ;;  %v2663_v60 = vpop.eup %2662  ;;  %v687_v20 = vmul.f32 0.5, %v3591_v29  ;;  %v814_v23 = vmul.f32 %v782_v3, %v686_v8  ;;  %v732_v29 = vmul.f32 0.70710677, %v3670_v10 }
 0x18c   : > { %2682 = vrcp.f32 %v943_v35  ;;  %1274 = vmatprep.mubr.f32.mxu1 %v3190_v0  ;;  %v584_v41 = vadd.f32 %v583_v36, %v3521_v48  ;;  %v783_v14 = vadd.f32 1.0, %v2663_v60  ;;  %v724_v15 = vmul.f32 0.70710677, %v3658_v2  ;;  %v3678_v39 = vpop.f32.mrf.mxu1 }
 0x18d   : > { %v2665_v59 = vpop.eup %2664  ;;  %2684 = vpow2.f32 %v2299_v19  ;;  %v587_v7 = vpop.f32.mrf.mxu0  ;;  %v3665_v4 = vadd.f32 %v1067_v42, %v3446_v47  ;;  %v1037_v47 = vsub.f32 %v813_v63, %v3459_v50  ;;  %v632_v30 = vadd.f32 %v3634_v12, %v3521_v48 }
 0x18e   : > { %v944_v9 = vadd.f32 1.0, %v2665_v59  ;;  %2686 = verf.f32 %v723_v34  ;;  %v2300_v16 = vmul.f32 -1.442695, %v584_v41  ;;  %v3682_v28 = vadd.f32 %v587_v7, %v3517_v46  ;;  %v3694_v41 = vpop.f32.mrf.mxu1 }
 0x18f   : > { %v2667_v27 = vpop.eup %2666  ;;  %1275 = vmatmul.mubr.f32.gmra.mxu1 %v3665_v4  ;;  %v589_v33 = vpop.f32.mrf.mxu0  ;;  %v815_v34 = vmul.f32 %v783_v14, %v687_v20  ;;  %v1038_v12 = vsub.f32 %v814_v23, %v3464_v51 }
 0x190   : > { %v2669_v18 = vpop.eup %2668  ;;  %2688 = vrcp.f32 %v944_v9  ;;  %1280 = vmatprep.mubr.f32.mxu1 %v3190_v0  ;;  %v590_v24 = vadd.f32 %v589_v33, %v3521_v48  ;;  %v1068_v57 = vmul.f32 %v2667_v27, %v1036_v11  ;;  %v688_v27 = vmul.f32 0.5, %v3603_v6  ;;  %v3706_v23 = vpop.f32.mrf.mxu1 }
 0x191   : > { %v2671_v21 = vpop.eup %2670  ;;  %2690 = vpow2.f32 %v2300_v16  ;;  %v593_v25 = vpop.f32.mrf.mxu0  ;;  %v784_v63 = vadd.f32 1.0, %v2669_v18  ;;  %v725_v11 = vmul.f32 0.70710677, %v3682_v28  ;;  %v2308_v33 = vmul.f32 -1.442695, %v632_v30 }
 0x192   : > { %v2673_v26 = vpop.eup %2672  ;;  %v1069_v31 = vmul.f32 %v2671_v21, %v1037_v47  ;;  %v2301_v36 = vmul.f32 -1.442695, %v590_v24  ;;  %v3688_v42 = vadd.f32 %v1068_v57, %v3453_v49  ;;  %2692 = verf.f32 %v724_v15 }
 0x193   : > { %v2675_v35 = vpop.eup %2674  ;;  %v945_v19 = vadd.f32 1.0, %v2673_v26  ;;  %v595_v60 = vpop.f32.mrf.mxu0  ;;  %v3691_v59 = vadd.f32 %v593_v25, %v3517_v46  ;;  %v1039_v15 = vsub.f32 %v815_v34, %v3469_v52  ;;  %v816_v21 = vmul.f32 %v784_v63, %v688_v27 }
 0x194   : > { %v596_v3 = vadd.f32 %v595_v60, %v3521_v48  ;;  %1281 = vmatmul.mubr.f32.gmra.mxu1 %v3688_v42  ;;  %v3699_v49 = vadd.f32 %v1069_v31, %v3459_v50  ;;  %v785_v24 = vadd.f32 1.0, %v2675_v35  ;;  %v689_v34 = vmul.f32 0.5, %v3614_v17 }
 0x195   : > { %v2677_v7 = vpop.eup %2676  ;;  %2694 = vrcp.f32 %v945_v19  ;;  %v599_v8 = vpop.f32.mrf.mxu0  ;;  %1286 = vmatprep.mubr.f32.mxu1 %v3190_v0  ;;  %v726_v50 = vmul.f32 0.70710677, %v3691_v59  ;;  %v1040_v63 = vsub.f32 %v816_v21, %v3474_v53 }
 0x196   : > { %v2679_v9 = vpop.eup %2678  ;;  %2696 = vpow2.f32 %v2301_v36  ;;  %v2302_v14 = vmul.f32 -1.442695, %v596_v3  ;;  %v1070_v47 = vmul.f32 %v2677_v7, %v1038_v12  ;;  %v3714_v30 = vadd.f32 %v599_v8, %v3517_v46  ;;  %v3723_v7 = vpop.f32.mrf.mxu1 }
 0x197   : > { %v946_v16 = vadd.f32 1.0, %v2679_v9  ;;  %2698 = verf.f32 %v732_v29  ;;  %v601_v18 = vpop.f32.mrf.mxu0  ;;  %v2681_v20 = vpop.eup %2680  ;;  %v817_v8 = vmul.f32 %v785_v24, %v689_v34 }
 0x198   : > { %2700 = vpow2.f32 %v2302_v14  ;;  %1287 = vmatmul.mubr.f32.gmra.mxu1 %v3699_v49  ;;  %v602_v25 = vadd.f32 %v601_v18, %v3521_v48  ;;  %v3711_v26 = vadd.f32 %v1070_v47, %v3464_v51  ;;  %v786_v9 = vadd.f32 1.0, %v2681_v20  ;;  %v3739_v24 = vpop.f32.mrf.mxu1 }
 0x199   : > { %v2683_v6 = vpop.eup %2682  ;;  %2702 = vrcp.f32 %v946_v16  ;;  %v605_v57 = vpop.f32.mrf.mxu0  ;;  %1292 = vmatprep.mubr.f32.mxu1 %v3190_v0  ;;  %v727_v14 = vmul.f32 0.70710677, %v3714_v30  ;;  %v638_v20 = vadd.f32 %v3661_v45, %v3521_v48 }
 0x19a   : > { %v2685_v29 = vpop.eup %2684  ;;  %2704 = verf.f32 %v725_v11  ;;  %v1071_v31 = vmul.f32 %v2683_v6, %v1039_v15  ;;  %v2303_v19 = vmul.f32 -1.442695, %v602_v25  ;;  %v3720_v51 = vadd.f32 %v605_v57, %v3517_v46 }
 0x19b   : > { %v947_v35 = vadd.f32 1.0, %v2685_v29  ;;  %2706 = vpow2.f32 %v2308_v33  ;;  %v607_v36 = vpop.f32.mrf.mxu0  ;;  %v2687_v60 = vpop.eup %2686  ;;  %v1041_v57 = vsub.f32 %v817_v8, %v3479_v54 }
 0x19c   : > { %2708 = verf.f32 %v726_v50  ;;  %v608_v3 = vadd.f32 %v607_v36, %v3521_v48  ;;  %1293 = vmatmul.mubr.f32.gmra.mxu1 %v3711_v26  ;;  %v3727_v27 = vadd.f32 %v1071_v31, %v3469_v52  ;;  %v787_v18 = vadd.f32 1.0, %v2687_v60 }
 0x19d   : > { %v2689_v12 = vpop.eup %2688  ;;  %2710 = vrcp.f32 %v947_v35  ;;  %v611_v17 = vpop.f32.mrf.mxu0  ;;  %1298 = vmatprep.mubr.f32.mxu1 %v3190_v0  ;;  %v690_v52 = vmul.f32 0.5, %v3629_v62  ;;  %v691_v50 = vmul.f32 0.5, %v3642_v58  ;;  %v728_v6 = vmul.f32 0.70710677, %v3720_v51 }
 0x19e   : > { %v2691_v11 = vpop.eup %2690  ;;  %2712 = vpow2.f32 %v2303_v19  ;;  %v2304_v16 = vmul.f32 -1.442695, %v608_v3  ;;  %v1072_v33 = vmul.f32 %v2689_v12, %v1040_v63  ;;  %v3734_v15 = vadd.f32 %v611_v17, %v3517_v46 }
 0x19f   : > { %v948_v47 = vadd.f32 1.0, %v2691_v11  ;;  %v613_v21 = vpop.f32.mrf.mxu0  ;;  %v2693_v25 = vpop.eup %2692  ;;  %v818_v34 = vmul.f32 %v786_v9, %v690_v52  ;;  %v3749_v58 = vadd.f32 %v3647_v43, %v3517_v46  ;;  %v819_v19 = vmul.f32 %v787_v18, %v691_v50 }
 0x1a0   : > { %2714 = vpow2.f32 %v2304_v16  ;;  %1299 = vmatmul.mubr.f32.gmra.mxu1 %v3727_v27  ;;  %v614_v45 = vadd.f32 %v613_v21, %v3521_v48  ;;  %v3745_v31 = vadd.f32 %v1072_v33, %v3474_v53  ;;  %v729_v36 = vmul.f32 0.70710677, %v3734_v15  ;;  %v3755_v9 = vpop.f32.mrf.mxu1 }
 0x1a1   : > { %2716 = vrcp.f32 %v948_v47  ;;  %v617_v29 = vpop.f32.mrf.mxu0  ;;  %1304 = vmatprep.mubr.f32.mxu1 %v3190_v0  ;;  %v788_v53 = vadd.f32 1.0, %v2693_v25  ;;  %v2309_v11 = vmul.f32 -1.442695, %v638_v20  ;;  %v692_v47 = vmul.f32 0.5, %v3658_v2 }
 0x1a2   : > { %v2695_v62 = vpop.eup %2694  ;;  %2718 = verf.f32 %v727_v14  ;;  %v2305_v60 = vmul.f32 -1.442695, %v614_v45  ;;  %v3758_v43 = vadd.f32 %v617_v29, %v3517_v46  ;;  %v644_v52 = vadd.f32 %v3694_v41, %v3521_v48  ;;  %v3774_v29 = vpop.f32.mrf.mxu1 }
 0x1a3   : > { %v2697_v35 = vpop.eup %2696  ;;  %v619_v63 = vpop.f32.mrf.mxu0  ;;  %v1073_v3 = vmul.f32 %v2695_v62, %v1041_v57  ;;  %2720 = verf.f32 %v728_v6  ;;  %v1042_v50 = vsub.f32 %v818_v34, %v3484_v55  ;;  %v820_v45 = vmul.f32 %v788_v53, %v692_v47  ;;  %v2984_v53 = vld [vmem:[%s3381_s18 + $0x70] sm:$0xff] }
 0x1a4   : > { %v3753_v12 = vpop.eup %2698  ;;  %v949_v8 = vadd.f32 1.0, %v2697_v35  ;;  %2722 = vpow2.f32 %v2305_v60  ;;  %1305 = vmatmul.mubr.f32.gmra.mxu1 %v3745_v31  ;;  %v620_v14 = vadd.f32 %v619_v63, %v3521_v48  ;;  %v730_v2 = vmul.f32 0.70710677, %v3758_v43  ;;  %v661_v47 = vpop.f32.mrf.mxu1 }
 0x1a5   : > { %v2701_v17 = vpop.eup %2700  ;;  %v623_v16 = vpop.f32.mrf.mxu0  ;;  %v3763_v33 = vadd.f32 %v1073_v3, %v3479_v54  ;;  %1310 = vmatprep.mubr.f32.mxu1 %v3190_v0  ;;  %v1043_v54 = vsub.f32 %v819_v19, %v3489_v56  ;;  %v733_v56 = vmul.f32 0.70710677, %v3749_v58  ;;  %v2310_v19 = vmul.f32 -1.442695, %v644_v52 }
 0x1a6   : > { %v2703_v18 = vpop.eup %2702  ;;  %2724 = vrcp.f32 %v949_v8  ;;  %v950_v21 = vadd.f32 1.0, %v2701_v17  ;;  %v2306_v6 = vmul.f32 -1.442695, %v620_v14  ;;  %v3777_v62 = vadd.f32 %v623_v16, %v3517_v46 }
 0x1a7   : > { %v2705_v20 = vpop.eup %2704  ;;  %2726 = verf.f32 %v729_v36  ;;  %v625_v25 = vpop.f32.mrf.mxu0  ;;  %v1074_v34 = vmul.f32 %v2703_v18, %v1042_v50  ;;  %v650_v63 = vadd.f32 %v3723_v7, %v3521_v48  ;;  %v693_v14 = vmul.f32 0.5, %v3682_v28  ;;  %v2986_v7 = vld [vmem:[%s3381_s18 + $0x78] sm:$0xff] }
 0x1a8   : > { %v3770_v57 = vpop.eup %2706  ;;  %2728 = vrcp.f32 %v950_v21  ;;  %1311 = vmatmul.mubr.f32.gmra.mxu1 %v3763_v33  ;;  %v626_v55 = vadd.f32 %v625_v25, %v3521_v48  ;;  %v789_v36 = vadd.f32 1.0, %v2705_v20  ;;  %v2985_v21 = vld [vmem:[%s3381_s18 + $0x80] sm:$0xff]  ;;  %v731_v20 = vmul.f32 0.70710677, %v3777_v62 }
 0x1a9   : > { %v2709_v41 = vpop.eup %2708  ;;  %2730 = vpow2.f32 %v2306_v6  ;;  %1316 = vmatprep.mubr.f32.mxu1 %v3190_v0  ;;  %v3786_v8 = vadd.f32 %v2984_v53, %v1074_v34  ;;  %v1044_v52 = vsub.f32 %v820_v45, %v2985_v21  ;;  %v3799_v45 = vadd.f32 %v3678_v39, %v3517_v46  ;;  %v2987_v39 = vld [vmem:[%s3381_s18 + $0x88] sm:$0xff] }
 0x1aa   : > { %v2711_v35 = vpop.eup %2710  ;;  %2732 = vpow2.f32 %v2309_v11  ;;  %v2307_v3 = vmul.f32 -1.442695, %v626_v55  ;;  %v790_v16 = vadd.f32 1.0, %v2709_v41  ;;  %v821_v25 = vmul.f32 %v789_v36, %v693_v14 }
 0x1ab   : > { %v2713_v60 = vpop.eup %2712  ;;  %v1075_v17 = vmul.f32 %v2711_v35, %v1043_v54  ;;  %2734 = verf.f32 %v730_v2  ;;  %v694_v54 = vmul.f32 0.5, %v3691_v59  ;;  %v2311_v41 = vmul.f32 -1.442695, %v650_v63  ;;  %v3801_v35 = vpop.f32.mrf.mxu1 }
 0x1ac   : > { %v951_v18 = vadd.f32 1.0, %v2713_v60  ;;  %2736 = vpow2.f32 %v2307_v3  ;;  %1317 = vmatmul.mubr.f32.gmra.mxu1 %v3786_v8  ;;  %v656_v59 = vadd.f32 %v3755_v9, %v3521_v48  ;;  %v1045_v53 = vsub.f32 %v821_v25, %v2987_v39 }
 0x1ad   : > { %v2715_v11 = vpop.eup %2714  ;;  %v3793_v50 = vadd.f32 %v2986_v7, %v1075_v17  ;;  %1322 = vmatprep.mubr.f32.mxu1 %v3190_v0  ;;  %v822_v34 = vmul.f32 %v790_v16, %v694_v54  ;;  %v734_v17 = vmul.f32 0.70710677, %v3799_v45  ;;  %v3813_v14 = vadd.f32 %v3706_v23, %v3517_v46 }
 0x1ae   : > { %v2717_v6 = vpop.eup %2716  ;;  %2738 = vrcp.f32 %v951_v18  ;;  %v952_v28 = vadd.f32 1.0, %v2715_v11  ;;  %v2988_v18 = vld [vmem:[%s3381_s18 + $0x90] sm:$0xff]  ;;  %v696_v23 = vmul.f32 0.5, %v3720_v51  ;;  %v3828_v51 = vadd.f32 %v3739_v24, %v3517_v46 }
 0x1af   : > { %v2719_v2 = vpop.eup %2718  ;;  %2740 = vpow2.f32 %v2310_v19  ;;  %v1076_v55 = vmul.f32 %v2717_v6, %v1044_v52  ;;  %v1046_v11 = vsub.f32 %v822_v34, %v2988_v18  ;;  %v2312_v6 = vmul.f32 -1.442695, %v656_v59 }
 0x1b0   : > { %2742 = vrcp.f32 %v952_v28  ;;  %v2721_v36 = vpop.eup %2720  ;;  %1323 = vmatmul.mubr.f32.gmra.mxu1 %v3793_v50  ;;  %v791_v19 = vadd.f32 1.0, %v2719_v2 }
 0x1b1   : > { %2744 = verf.f32 %v731_v20  ;;  %v3806_v60 = vadd.f32 %v2985_v21, %v1076_v55  ;;  %v2723_v3 = vpop.eup %2722  ;;  %1328 = vmatprep.mubr.f32.mxu1 %v3190_v0  ;;  %v695_v21 = vmul.f32 0.5, %v3714_v30  ;;  %v792_v52 = vadd.f32 1.0, %v2721_v36  ;;  %v667_v20 = vpop.f32.mrf.mxu1 }
 0x1b2   : > { %2746 = verf.f32 %v733_v56  ;;  %v953_v9 = vadd.f32 1.0, %v2723_v3  ;;  %v662_v55 = vadd.f32 %v661_v47, %v3521_v48  ;;  %v735_v36 = vmul.f32 0.70710677, %v3813_v14 }
 0x1b3   : > { %v2725_v63 = vpop.eup %2724  ;;  %2748 = vpow2.f32 %v2311_v41  ;;  %v823_v54 = vmul.f32 %v791_v19, %v695_v21  ;;  %v824_v34 = vmul.f32 %v792_v52, %v696_v23  ;;  %v3824_v59 = vpop.f32.mrf.mxu1  ;;  %v956_v47 = vadd.f32 1.0, %v3770_v57 }
 0x1b4   : > { %v2727_v16 = vpop.eup %2726  ;;  %v1077_v56 = vmul.f32 %v2725_v63, %v1045_v53  ;;  %2750 = vrcp.f32 %v953_v9  ;;  %1329 = vmatmul.mubr.f32.gmra.mxu1 %v3806_v60  ;;  %v2989_v63 = vld [vmem:[%s3381_s18 + $0x98] sm:$0xff]  ;;  %v668_v21 = vadd.f32 %v667_v20, %v3521_v48  ;;  %v3843_v20 = vadd.f32 %v3774_v29, %v3517_v46 }
 0x1b5   : > { %v2729_v7 = vpop.eup %2728  ;;  %1334 = vmatprep.mubr.f32.mxu1 %v3190_v0  ;;  %2752 = verf.f32 %v734_v17  ;;  %v793_v53 = vadd.f32 1.0, %v2727_v16  ;;  %v1047_v17 = vsub.f32 %v823_v54, %v2989_v63  ;;  %v697_v16 = vmul.f32 0.5, %v3734_v15 }
 0x1b6   : > { %v2731_v25 = vpop.eup %2730  ;;  %v3820_v28 = vadd.f32 %v2987_v39, %v1077_v56  ;;  %v1078_v2 = vmul.f32 %v2729_v7, %v1046_v11  ;;  %v2313_v11 = vmul.f32 -1.442695, %v662_v55  ;;  %v2990_v7 = vld [vmem:[%s3381_s18 + $0xa0] sm:$0xff] }
 0x1b7   : > { %v2733_v41 = vpop.eup %2732  ;;  %v954_v30 = vadd.f32 1.0, %v2731_v25  ;;  %v673_v25 = vpop.f32.mrf.mxu1 }
 0x1b8   : > { %v2735_v3 = vpop.eup %2734  ;;  %1335 = vmatmul.mubr.f32.gmra.mxu1 %v3820_v28  ;;  %v3831_v39 = vadd.f32 %v2988_v18, %v1078_v2  ;;  %v957_v56 = vadd.f32 1.0, %v2733_v41  ;;  %v1048_v18 = vsub.f32 %v824_v34, %v2990_v7  ;;  %v825_v2 = vmul.f32 %v793_v53, %v697_v16 }
 0x1b9   : > { %2754 = vrcp.f32 %v954_v30  ;;  %v2737_v19 = vpop.eup %2736  ;;  %1340 = vmatprep.mubr.f32.mxu1 %v3190_v0  ;;  %v794_v54 = vadd.f32 1.0, %v2735_v3  ;;  %v698_v34 = vmul.f32 0.5, %v3758_v43  ;;  %v674_v3 = vadd.f32 %v673_v25, %v3521_v48  ;;  %v2992_v25 = vld [vmem:[%s3381_s18 + $0xb0] sm:$0xff] }
 0x1ba   : > { %2756 = vpow2.f32 %v2312_v6  ;;  %v955_v24 = vadd.f32 1.0, %v2737_v19  ;;  %v736_v6 = vmul.f32 0.70710677, %v3828_v51  ;;  %v700_v19 = vmul.f32 0.5, %v3670_v10 }
 0x1bb   : > { %v2739_v9 = vpop.eup %2738  ;;  %2758 = verf.f32 %v735_v36  ;;  %v2314_v36 = vmul.f32 -1.442695, %v668_v21  ;;  %v796_v43 = vadd.f32 1.0, %v3753_v12  ;;  %v737_v48 = vmul.f32 0.70710677, %v3843_v20 }
 0x1bc   : > { %v2741_v52 = vpop.eup %2740  ;;  %v1079_v23 = vmul.f32 %v2739_v9, %v1047_v17  ;;  %2760 = vrcp.f32 %v955_v24  ;;  %1341 = vmatmul.mubr.f32.gmra.mxu1 %v3831_v39  ;;  %v2991_v17 = vld [vmem:[%s3381_s18 + $0xa8] sm:$0xff]  ;;  %v826_v9 = vmul.f32 %v794_v54, %v698_v34  ;;  %v1888_v24 = vld [vmem:[#allocation8 + $0x78] sm:$0xff]  ;;  %v3859_v10 = vadd.f32 %v3801_v35, %v3517_v46 }
 0x1bd   : > { %v2743_v57 = vpop.eup %2742  ;;  %2762 = vrcp.f32 %v956_v47  ;;  %1346 = vmatprep.mubr.f32.mxu1 %v3190_v0  ;;  %v958_v47 = vadd.f32 1.0, %v2741_v52  ;;  %v1049_v29 = vsub.f32 %v825_v2, %v2991_v17  ;;  %2404 = vmatprep.subr.mxu0 %v1888_v24  ;;  %v2315_v21 = vmul.f32 -1.442695, %v674_v3  ;;  %v1886_v2 = vld [vmem:[#allocation8 + $0x68] sm:$0xff]  ;;  %v1885_v3 = vld [vmem:[#allocation8 + $0x60] sm:$0xff] }
 0x1be   : > { %v2745_v15 = vpop.eup %2744  ;;  %v3846_v41 = vadd.f32 %v2989_v63, %v1079_v23  ;;  %v1080_v30 = vmul.f32 %v2743_v57, %v1048_v18  ;;  %2764 = vpow2.f32 %v2313_v11  ;;  %v699_v11 = vmul.f32 0.5, %v3777_v62  ;;  %2405 = vmatpush3.msra.mxu0 %v1888_v24 }
 0x1bf   : > { %v2747_v55 = vpop.eup %2746  ;;  %2766 = vrcp.f32 %v957_v56  ;;  %v795_v16 = vadd.f32 1.0, %v2745_v15  ;;  %v1887_v56 = vld [vmem:[#allocation8 + $0x70] sm:$0xff]  ;;  %v701_v12 = vmul.f32 0.5, %v3749_v58  ;;  %v1050_v23 = vsub.f32 %v826_v9, %v2992_v25 }
 0x1c0   : > { %v2749_v53 = vpop.eup %2748  ;;  %1347 = vmatmul.mubr.f32.gmra.mxu1 %v3846_v41  ;;  %v3853_v63 = vadd.f32 %v2990_v7, %v1080_v30  ;;  %2768 = verf.f32 %v736_v6  ;;  %2406 = vmatprep.subr.mxu0 %v1887_v56  ;;  %v828_v6 = vmul.f32 %v796_v43, %v700_v19  ;;  %v797_v54 = vadd.f32 1.0, %v2747_v55 }
 0x1c1   : > { %v2751_v18 = vpop.eup %2750  ;;  %1352 = vmatprep.mubr.f32.mxu1 %v3190_v0  ;;  %2770 = vpow2.f32 %v2314_v36  ;;  %v827_v57 = vmul.f32 %v795_v16, %v699_v11  ;;  %2407 = vmatpush3.msra.mxu0 %v1887_v56  ;;  %v959_v15 = vadd.f32 1.0, %v2749_v53  ;;  %v738_v30 = vmul.f32 0.70710677, %v3859_v10  ;;  %v2993_v53 = vld [vmem:[%s3381_s18 + $0xb8] sm:$0xff]  ;;  %v2994_v16 = vld [vmem:[%s3381_s18 + $0xc0] sm:$0xff]  ;;  %v1883_v11 = vld [vmem:[#allocation8 + $0x50] sm:$0xff] }
 0x1c2   : > { %v1081_v52 = vmul.f32 %v2751_v18, %v1049_v29  ;;  %v2753_v7 = vpop.eup %2752  ;;  %2772 = vrcp.f32 %v958_v47  ;;  %2408 = vmatprep.subr.mxu0 %v1886_v2  ;;  %v3872_v34 = vadd.f32 %v3824_v59, %v3517_v46  ;;  %v702_v55 = vmul.f32 0.5, %v3799_v45  ;;  %v1884_v29 = vld [vmem:[#allocation8 + $0x58] sm:$0xff] }
 0x1c3   : > { %2774 = verf.f32 %v737_v48  ;;  %2409 = vmatpush3.msra.mxu0 %v1886_v2  ;;  %v1051_v47 = vsub.f32 %v827_v57, %v2993_v53  ;;  %v1052_v46 = vsub.f32 %v828_v6, %v2994_v16  ;;  %v798_v59 = vadd.f32 1.0, %v2753_v7  ;;  %v1882_v7 = vld [vmem:[#allocation8 + $0x48] sm:$0xff] }
 0x1c4   : > { %1353 = vmatmul.mubr.f32.gmra.mxu1 %v3853_v63  ;;  %v3866_v35 = vadd.f32 %v2991_v17, %v1081_v52  ;;  %2776 = vpow2.f32 %v2315_v21  ;;  %2410 = vmatprep.subr.mxu0 %v1885_v3  ;;  %v829_v43 = vmul.f32 %v797_v54, %v701_v12  ;;  %v739_v45 = vmul.f32 0.70710677, %v3872_v34  ;;  %v2995_v2 = vld [vmem:[%s3381_s18 + $0xc8] sm:$0xff] }
 0x1c5   : > { %1358 = vmatprep.mubr.f32.mxu1 %v3190_v0  ;;  %2411 = vmatpush3.msra.mxu0 %v1885_v3  ;;  %2778 = vrcp.f32 %v959_v15  ;;  %v1881_v15 = vld [vmem:[#allocation8 + $0x40] sm:$0xff] }
 0x1c6   : > { %v2755_v62 = vpop.eup %2754  ;;  %2412 = vmatprep.subr.mxu0 %v1884_v29  ;;  %2780 = verf.f32 %v738_v30 }
 0x1c7   : > { %v2757_v58 = vpop.eup %2756  ;;  %v1082_v36 = vmul.f32 %v2755_v62, %v1050_v23  ;;  %2413 = vmatpush3.msra.mxu0 %v1884_v29  ;;  %v703_v23 = vmul.f32 0.5, %v3813_v14  ;;  %v1053_v62 = vsub.f32 %v829_v43, %v2995_v2  ;;  %v1880_v14 = vld [vmem:[#allocation8 + $0x38] sm:$0xff] }
 0x1c8   : > { %v2759_v19 = vpop.eup %2758  ;;  %1359 = vmatmul.mubr.f32.gmra.mxu1 %v3866_v35  ;;  %v960_v24 = vadd.f32 1.0, %v2757_v58  ;;  %2414 = vmatprep.subr.mxu0 %v1883_v11 }
 0x1c9   : > { %v3877_v17 = vadd.f32 %v2992_v25, %v1082_v36  ;;  %v2761_v9 = vpop.eup %2760  ;;  %1364 = vmatprep.mubr.f32.mxu1 %v3190_v0  ;;  %2415 = vmatpush3.msra.mxu0 %v1883_v11  ;;  %v830_v25 = vmul.f32 %v798_v59, %v702_v55  ;;  %v799_v12 = vadd.f32 1.0, %v2759_v19  ;;  %v2996_v36 = vld [vmem:[%s3381_s18 + $0xd0] sm:$0xff]  ;;  %v704_v55 = vmul.f32 0.5, %v3828_v51  ;;  %v2997_v51 = vld [vmem:[%s3381_s18 + $0xd8] sm:$0xff] }
 0x1ca   : > { %v2763_v18 = vpop.eup %2762  ;;  %v1083_v48 = vmul.f32 %v2761_v9, %v1051_v47  ;;  %2782 = vrcp.f32 %v960_v24  ;;  %2416 = vmatprep.subr.mxu0 %v1882_v7  ;;  %v1879_v59 = vld [vmem:[#allocation8 + $0x30] sm:$0xff] }
 0x1cb   : > { %v2765_v21 = vpop.eup %2764  ;;  %2784 = verf.f32 %v739_v45  ;;  %v1084_v54 = vmul.f32 %v2763_v18, %v1052_v46  ;;  %2417 = vmatpush3.msra.mxu0 %v1882_v7  ;;  %v1054_v3 = vsub.f32 %v830_v25, %v2996_v36  ;;  %v831_v19 = vmul.f32 %v799_v12, %v703_v23  ;;  %v1878_v18 = vld [vmem:[#allocation8 + $0x28] sm:$0xff]  ;;  %v1877_v25 = vld [vmem:[#allocation8 + $0x20] sm:$0xff]  ;;  %v1876_v12 = vld [vmem:[#allocation8 + $0x18] sm:$0xff] }
 0x1cc   : > { %v2767_v52 = vpop.eup %2766  ;;  %1365 = vmatmul.mubr.f32.gmra.mxu1 %v3877_v17  ;;  %v3883_v56 = vadd.f32 %v2993_v53, %v1083_v48  ;;  %v961_v6 = vadd.f32 1.0, %v2765_v21  ;;  %2418 = vmatprep.subr.mxu0 %v1881_v15  ;;  %v705_v48 = vmul.f32 0.5, %v3843_v20  ;;  %v2998_v20 = vld [vmem:[%s3381_s18 + $0xe0] sm:$0xff] }
 0x1cd   : > { %1370 = vmatprep.mubr.f32.mxu1 %v3190_v0  ;;  %v2769_v57 = vpop.eup %2768  ;;  %2419 = vmatpush3.msra.mxu0 %v1881_v15  ;;  %v3892_v9 = vadd.f32 %v2994_v16, %v1084_v54  ;;  %v1085_v46 = vmul.f32 %v2767_v52, %v1053_v62  ;;  %v1055_v43 = vsub.f32 %v831_v19, %v2997_v51  ;;  %v2999_v19 = vld [vmem:[%s3381_s18 + $0xe8] sm:$0xff] }
 0x1ce   : > { %v2771_v58 = vpop.eup %2770  ;;  %v800_v53 = vadd.f32 1.0, %v2769_v57  ;;  %2420 = vmatprep.subr.mxu0 %v1880_v14  ;;  %2786 = vrcp.f32 %v961_v6  ;;  %v706_v6 = vmul.f32 0.5, %v3859_v10 }
 0x1cf   : > { %v2773_v30 = vpop.eup %2772  ;;  %v962_v29 = vadd.f32 1.0, %v2771_v58  ;;  %2421 = vmatpush3.msra.mxu0 %v1880_v14  ;;  %v3898_v52 = vadd.f32 %v2995_v2, %v1085_v46  ;;  %v1875_v14 = vld [vmem:[#allocation8 + $0x10] sm:$0xff]  ;;  %v1873_v46 = vld [vmem:[#allocation8] sm:$0xff] }
 0x1d0   : > { %1371 = vmatmul.mubr.f32.gmra.mxu1 %v3883_v56  ;;  %v2775_v47 = vpop.eup %2774  ;;  %2422 = vmatprep.subr.mxu0 %v1879_v59  ;;  %v832_v45 = vmul.f32 %v800_v53, %v704_v55  ;;  %v1086_v7 = vmul.f32 %v2773_v30, %v1054_v3  ;;  %v1874_v3 = vld [vmem:[#allocation8 + $0x8] sm:$0xff]  ;;  %v707_v55 = vmul.f32 0.5, %v3872_v34 }
 0x1d1   : > { %1376 = vmatprep.mubr.f32.mxu1 %v3190_v0  ;;  %v2777_v24 = vpop.eup %2776  ;;  %2423 = vmatpush3.msra.mxu0 %v1879_v59  ;;  %v801_v11 = vadd.f32 1.0, %v2775_v47  ;;  %2788 = vrcp.f32 %v962_v29 }
 0x1d2   : > { %2424 = vmatprep.subr.mxu0 %v1878_v18  ;;  %v2779_v16 = vpop.eup %2778  ;;  %v963_v21 = vadd.f32 1.0, %v2777_v24  ;;  %v1056_v57 = vsub.f32 %v832_v45, %v2998_v20  ;;  %v3904_v15 = vadd.f32 %v2996_v36, %v1086_v7  ;;  %v3000_v24 = vld [vmem:[%s3381_s18 + $0xf0] sm:$0xff] }
 0x1d3   : > { %2425 = vmatpush3.msra.mxu0 %v1878_v18  ;;  %v2781_v23 = vpop.eup %2780  ;;  %v833_v62 = vmul.f32 %v801_v11, %v705_v48  ;;  %v1087_v58 = vmul.f32 %v2779_v16, %v1055_v43 }
 0x1d4   : > { %1377 = vmatmul.mubr.f32.gmra.mxu1 %v3892_v9  ;;  %2426 = vmatprep.subr.mxu0 %v1877_v25  ;;  %v802_v54 = vadd.f32 1.0, %v2781_v23  ;;  %2790 = vrcp.f32 %v963_v21 }
 0x1d5   : > { %1382 = vmatprep.mubr.f32.mxu1 %v3190_v0  ;;  %2427 = vmatpush3.msra.mxu0 %v1877_v25  ;;  %v1057_v10 = vsub.f32 %v833_v62, %v2999_v19  ;;  %v3910_v47 = vadd.f32 %v2997_v51, %v1087_v58  ;;  %v3001_v51 = vld [vmem:[%s3381_s18 + $0xf8] sm:$0xff]  ;;  %s3191_s18 = smov [#allocation10]  }
 0x1d6   : > { %2428 = vmatprep.subr.mxu0 %v1876_v12  ;;  %v834_v53 = vmul.f32 %v802_v54, %v706_v6  ;;  %s3112_s30 = sshll.u32 %s3191_s18, 4  ;;  %s3113_s30 = int_to_ptr.vmem [resolvable:$false] %s3112_s30 }
 0x1d7   : > { %v2783_v2 = vpop.eup %2782  ;;  %2429 = vmatpush3.msra.mxu0 %v1876_v12  ;;  %s3114_s9 = scalar_lea.vmem %s3113_s30, 8192  ;;  %p3115_p5 = scmp.lt.s32.totalorder %s4271_s22, %s3113_s30 }
 0x1d8   : > { %1383 = vmatmul.mubr.f32.gmra.mxu1 %v3898_v52  ;;  %v2785_v30 = vpop.eup %2784  ;;  %2430 = vmatprep.subr.mxu0 %v1875_v14  ;;  %v1088_v29 = vmul.f32 %v2783_v2, %v1056_v57  ;;  %v1058_v34 = vsub.f32 %v834_v53, %v3000_v24  ;;  %p3116_p3 = scmp.lt.s32.totalorder %s3114_s9, %s3108_s16 }
 0x1d9   : > { %1388 = vmatprep.mubr.f32.mxu1 %v3190_v0  ;;  %2431 = vmatpush3.msra.mxu0 %v1875_v14  ;;  %v803_v36 = vadd.f32 1.0, %v2785_v30 }
 0x1da   : > { %2432 = vmatprep.subr.mxu0 %v1874_v3  ;;  %v3915_v43 = vadd.f32 %v2998_v20, %v1088_v29  ;;  %v1156_v20 = vld [vmem:[%s4321_s4] sm:$0x3]  ;;  %p3117_p7 = por %p3116_p3, %p3115_p5 }
 0x1db   : > { %2433 = vmatpush3.msra.mxu0 %v1874_v3  ;;  %v2787_v59 = vpop.eup %2786  ;;  %v835_v18 = vmul.f32 %v803_v36, %v707_v55  ;;  %v3936_v57 = vrot.slane %v1156_v20, %v415_v44  ;;  %v3940_v62 = vrot.slane %v1156_v20, %v411_v40 }
 0x1dc   : > { %1389 = vmatmul.mubr.f32.gmra.mxu1 %v3904_v15  ;;  %2434 = vmatprep.subr.mxu0 %v1873_v46  ;;  %v1089_v45 = vmul.f32 %v2787_v59, %v1057_v10  ;;  %p3118_p9 = pnand %p3117_p7, %p3111_p0 }
 0x1dd   : > { %1394 = vmatprep.mubr.f32.mxu1 %v3190_v0  ;;  %2435 = vmatpush3.msra.mxu0 %v1873_v46  ;;  %v1059_v11 = vsub.f32 %v835_v18, %v3001_v51 }
 0x1de   : > { %v2789_v48 = vpop.eup %2788  ;;  %v3920_v16 = vadd.f32 %v2999_v19, %v1089_v45 }
 0x1df   : > { %v1090_v21 = vmul.f32 %v2789_v48, %v1058_v34 }
 0x1e0   : > { %1395 = vmatmul.mubr.f32.gmra.mxu1 %v3910_v47 }
 0x1e1   : > { %1400 = vmatprep.mubr.f32.mxu1 %v3190_v0  ;;  %v2791_v7 = vpop.eup %2790  ;;  %v3924_v25 = vadd.f32 %v3000_v24, %v1090_v21 }
 0x1e2   : > { %v1091_v23 = vmul.f32 %v2791_v7, %v1059_v11 }
 0x1e4   : > { %1401 = vmatmul.mubr.f32.gmra.mxu1 %v3915_v43  ;;  %v3928_v12 = vadd.f32 %v3001_v51, %v1091_v23 }
 0x1e5   : > { %1406 = vmatprep.mubr.f32.mxu1 %v3190_v0 }
 0x1e8   : > { %1407 = vmatmul.mubr.f32.gmra.mxu1 %v3920_v16 }
 0x1e9   : > { %1412 = vmatprep.mubr.f32.mxu1 %v3190_v0 }
 0x1ec   : > { %1413 = vmatmul.mubr.f32.gmra.mxu1 %v3924_v25 }
 0x1ed   : > { %1418 = vmatprep.mubr.f32.mxu1 %v3190_v0 }
 0x1f0   : > { %1419 = vmatmul.mubr.f32.gmra.mxu1 %v3928_v12 }
 0x232   : > { %v1234_v6 = vpop.f32.mrf.mxu1 }
 0x233   : > { %v1235_v54 = vadd.f32 %v1234_v6, %v3940_v62 }
 0x234   : > { %v1236_v2 = vpop.f32.mrf.mxu1 }
 0x235   : > { %v1237_v0 = vadd.f32 %v1236_v2, %v3936_v57  ;;  %v1457_v19 = vmul.f32 0.70710677, %v1235_v54 }
 0x236   : > { %v1240_v58 = vpop.f32.mrf.mxu1 }
 0x237   : > { %v2316_v14 = vmul.f32 -1.442695, %v1237_v0  ;;  %v3946_v44 = vadd.f32 %v1240_v58, %v3940_v62 }
 0x238   : > { %v1242_v30 = vpop.f32.mrf.mxu1 }
 0x239   : > { %2792 = vpow2.f32 %v2316_v14  ;;  %v1243_v3 = vadd.f32 %v1242_v30, %v3936_v57  ;;  %v1458_v53 = vmul.f32 0.70710677, %v3946_v44 }
 0x23a   : > { %v1246_v10 = vpop.f32.mrf.mxu1 }
 0x23b   : > { %v2317_v38 = vmul.f32 -1.442695, %v1243_v3  ;;  %v3951_v36 = vadd.f32 %v1246_v10, %v3940_v62 }
 0x23c   : > { %v1248_v40 = vpop.f32.mrf.mxu1 }
 0x23d   : > { %2794 = vpow2.f32 %v2317_v38  ;;  %v1249_v55 = vadd.f32 %v1248_v40, %v3936_v57  ;;  %v1459_v18 = vmul.f32 0.70710677, %v3951_v36 }
 0x23e   : > { %2796 = verf.f32 %v1457_v19  ;;  %v1252_v29 = vpop.f32.mrf.mxu1 }
 0x23f   : > { %v2318_v46 = vmul.f32 -1.442695, %v1249_v55  ;;  %v3954_v59 = vadd.f32 %v1252_v29, %v3940_v62 }
 0x240   : > { %v1254_v24 = vpop.f32.mrf.mxu1 }
 0x241   : > { %2798 = vpow2.f32 %v2318_v46  ;;  %v1255_v34 = vadd.f32 %v1254_v24, %v3936_v57  ;;  %v1460_v51 = vmul.f32 0.70710677, %v3954_v59 }
 0x242   : > { %2800 = verf.f32 %v1458_v53 }
 0x243   : > { %v1258_v45 = vpop.f32.mrf.mxu1  ;;  %v2319_v48 = vmul.f32 -1.442695, %v1255_v34 }
 0x244   : > { %v3960_v11 = vadd.f32 %v1258_v45, %v3940_v62 }
 0x245   : > { %v1260_v21 = vpop.f32.mrf.mxu1  ;;  %2802 = vpow2.f32 %v2319_v48 }
 0x246   : > { %v2793_v7 = vpop.eup %2792  ;;  %2804 = verf.f32 %v1459_v18  ;;  %v1261_v23 = vadd.f32 %v1260_v21, %v3936_v57  ;;  %v1461_v2 = vmul.f32 0.70710677, %v3960_v11 }
 0x247   : > { %v1264_v20 = vpop.f32.mrf.mxu1  ;;  %v1681_v6 = vadd.f32 1.0, %v2793_v7  ;;  %2806 = verf.f32 %v1460_v51  ;;  %v1425_v51 = vmul.f32 0.5, %v1235_v54 }
 0x248   : > { %v2320_v0 = vmul.f32 -1.442695, %v1261_v23  ;;  %v3965_v58 = vadd.f32 %v1264_v20, %v3940_v62 }
 0x249   : > { %v1266_v14 = vpop.f32.mrf.mxu1  ;;  %2808 = vrcp.f32 %v1681_v6 }
 0x24a   : > { %v2795_v30 = vpop.eup %2794  ;;  %2810 = vpow2.f32 %v2320_v0  ;;  %v1267_v3 = vadd.f32 %v1266_v14, %v3936_v57  ;;  %v1462_v40 = vmul.f32 0.70710677, %v3965_v58 }
 0x24b   : > { %v1270_v19 = vpop.f32.mrf.mxu1  ;;  %v2797_v10 = vpop.eup %2796  ;;  %v1682_v38 = vadd.f32 1.0, %v2795_v30  ;;  %2812 = verf.f32 %v1461_v2 }
 0x24c   : > { %v2321_v55 = vmul.f32 -1.442695, %v1267_v3  ;;  %v3970_v53 = vadd.f32 %v1270_v19, %v3940_v62  ;;  %v1521_v24 = vadd.f32 1.0, %v2797_v10  ;;  %v1426_v19 = vmul.f32 0.5, %v3946_v44 }
 0x24d   : > { %v1272_v29 = vpop.f32.mrf.mxu1  ;;  %2814 = vrcp.f32 %v1682_v38  ;;  %v1427_v44 = vmul.f32 0.5, %v3951_v36 }
 0x24e   : > { %v2799_v46 = vpop.eup %2798  ;;  %2816 = vpow2.f32 %v2321_v55  ;;  %v1273_v34 = vadd.f32 %v1272_v29, %v3936_v57  ;;  %v1463_v21 = vmul.f32 0.70710677, %v3970_v53  ;;  %v1553_v2 = vmul.f32 %v1521_v24, %v1425_v51 }
 0x24f   : > { %v1276_v18 = vpop.f32.mrf.mxu1  ;;  %v2801_v45 = vpop.eup %2800  ;;  %v1683_v48 = vadd.f32 1.0, %v2799_v46  ;;  %2818 = verf.f32 %v1462_v40  ;;  %v1428_v51 = vmul.f32 0.5, %v3954_v59 }
 0x250   : > { %v2322_v7 = vmul.f32 -1.442695, %v1273_v34  ;;  %v3975_v20 = vadd.f32 %v1276_v18, %v3940_v62  ;;  %v1522_v0 = vadd.f32 1.0, %v2801_v45  ;;  %v1777_v46 = vsub.f32 %v1553_v2, %v3574_v5 }
 0x251   : > { %v1278_v23 = vpop.f32.mrf.mxu1  ;;  %2820 = vrcp.f32 %v1683_v48 }
 0x252   : > { %v2803_v6 = vpop.eup %2802  ;;  %2822 = vpow2.f32 %v2322_v7  ;;  %v1279_v14 = vadd.f32 %v1278_v23, %v3936_v57  ;;  %v1464_v40 = vmul.f32 0.70710677, %v3975_v20  ;;  %v1554_v24 = vmul.f32 %v1522_v0, %v1426_v19 }
 0x253   : > { %v2805_v30 = vpop.eup %2804  ;;  %v1684_v3 = vadd.f32 1.0, %v2803_v6  ;;  %2824 = verf.f32 %v1463_v21 }
 0x254   : > { %v2323_v54 = vmul.f32 -1.442695, %v1279_v14  ;;  %v1282_v10 = vpop.f32.mrf.mxu1  ;;  %v2807_v38 = vpop.eup %2806  ;;  %v1523_v34 = vadd.f32 1.0, %v2805_v30  ;;  %v1778_v19 = vsub.f32 %v1554_v24, %v3586_v22 }
 0x255   : > { %2826 = vrcp.f32 %v1684_v3  ;;  %v3981_v55 = vadd.f32 %v1282_v10, %v3940_v62  ;;  %v1524_v21 = vadd.f32 1.0, %v2807_v38 }
 0x256   : > { %v2809_v29 = vpop.eup %2808  ;;  %2828 = vpow2.f32 %v2323_v54  ;;  %v1284_v18 = vpop.f32.mrf.mxu1  ;;  %v1555_v36 = vmul.f32 %v1523_v34, %v1427_v44 }
 0x257   : > { %v2811_v45 = vpop.eup %2810  ;;  %v1285_v48 = vadd.f32 %v1284_v18, %v3936_v57  ;;  %v1809_v6 = vmul.f32 %v2809_v29, %v1777_v46  ;;  %2830 = verf.f32 %v1464_v40  ;;  %v1465_v3 = vmul.f32 0.70710677, %v3981_v55 }
 0x258   : > { %v1685_v7 = vadd.f32 1.0, %v2811_v45  ;;  %v1288_v23 = vpop.f32.mrf.mxu1  ;;  %v2813_v14 = vpop.eup %2812  ;;  %v1556_v29 = vmul.f32 %v1524_v21, %v1428_v51 }
 0x259   : > { %v2324_v2 = vmul.f32 -1.442695, %v1285_v48  ;;  %v3989_v0 = vadd.f32 %v1288_v23, %v3940_v62  ;;  %v1841_v59 = vadd.f32 %v1809_v6, %v3574_v5  ;;  %v1779_v5 = vsub.f32 %v1555_v36, %v3598_v61 }
 0x25a   : > { %v2815_v30 = vpop.eup %2814  ;;  %2832 = vrcp.f32 %v1685_v7  ;;  %v1290_v54 = vpop.f32.mrf.mxu1  ;;  %v1525_v44 = vadd.f32 1.0, %v2813_v14  ;;  %v1429_v6 = vmul.f32 0.5, %v3960_v11  ;;  %v1780_v14 = vsub.f32 %v1556_v29, %v3610_v13 }
 0x25b   : > { %v2817_v10 = vpop.eup %2816  ;;  %2834 = vpow2.f32 %v2324_v2  ;;  %v1291_v38 = vadd.f32 %v1290_v54, %v3936_v57  ;;  %2436 = vmatprep.mubr.f32.mxu0 %v1841_v59  ;;  %v1810_v18 = vmul.f32 %v2815_v30, %v1778_v19  ;;  %v1466_v48 = vmul.f32 0.70710677, %v3989_v0 }
 0x25c   : > { %v1686_v40 = vadd.f32 1.0, %v2817_v10  ;;  %v1294_v46 = vpop.f32.mrf.mxu1  ;;  %v2819_v45 = vpop.eup %2818  ;;  %2836 = verf.f32 %v1465_v3  ;;  %v1430_v2 = vmul.f32 0.5, %v3965_v58 }
 0x25d   : > { %v2325_v23 = vmul.f32 -1.442695, %v1291_v38  ;;  %v3996_v24 = vadd.f32 %v1294_v46, %v3940_v62  ;;  %v1842_v51 = vadd.f32 %v1810_v18, %v3586_v22  ;;  %v1526_v30 = vadd.f32 1.0, %v2819_v45 }
 0x25e   : > { %v2821_v34 = vpop.eup %2820  ;;  %2838 = vrcp.f32 %v1686_v40  ;;  %v1296_v7 = vpop.f32.mrf.mxu1  ;;  %v1557_v40 = vmul.f32 %v1525_v44, %v1429_v6 }
 0x25f   : > { %v2823_v21 = vpop.eup %2822  ;;  %2840 = vpow2.f32 %v2325_v23  ;;  %v1297_v3 = vadd.f32 %v1296_v7, %v3936_v57  ;;  %2437 = vmatmul.mubr.f32.vlgmr.msra.gmra.mxu0 %v1842_v51  ;;  %v1811_v59 = vmul.f32 %v2821_v34, %v1779_v5  ;;  %v1467_v36 = vmul.f32 0.70710677, %v3996_v24 }
 0x260   : > { %v1687_v19 = vadd.f32 1.0, %v2823_v21  ;;  %v1300_v54 = vpop.f32.mrf.mxu1  ;;  %v2825_v10 = vpop.eup %2824  ;;  %2842 = verf.f32 %v1466_v48  ;;  %v1558_v23 = vmul.f32 %v1526_v30, %v1430_v2  ;;  %v1781_v21 = vsub.f32 %v1557_v40, %v3624_v32 }
 0x261   : > { %v2326_v22 = vmul.f32 -1.442695, %v1297_v3  ;;  %v4006_v11 = vadd.f32 %v1300_v54, %v3940_v62  ;;  %v1843_v58 = vadd.f32 %v1811_v59, %v3598_v61  ;;  %v1527_v5 = vadd.f32 1.0, %v2825_v10 }
 0x262   : > { %v2827_v38 = vpop.eup %2826  ;;  %2844 = vrcp.f32 %v1687_v19  ;;  %v1302_v46 = vpop.f32.mrf.mxu1  ;;  %v1431_v30 = vmul.f32 0.5, %v3970_v53  ;;  %v1782_v54 = vsub.f32 %v1558_v23, %v3638_v37  ;;  %v1432_v23 = vmul.f32 0.5, %v3975_v20 }
 0x263   : > { %v2829_v18 = vpop.eup %2828  ;;  %2846 = vpow2.f32 %v2326_v22  ;;  %v1303_v45 = vadd.f32 %v1302_v46, %v3936_v57  ;;  %2439 = vmatprep.mubr.f32.mxu0 %v1843_v58  ;;  %v1812_v48 = vmul.f32 %v2827_v38, %v1780_v14  ;;  %v1468_v61 = vmul.f32 0.70710677, %v4006_v11 }
 0x264   : > { %v1688_v34 = vadd.f32 1.0, %v2829_v18  ;;  %v1306_v29 = vpop.f32.mrf.mxu1  ;;  %2848 = verf.f32 %v1467_v36  ;;  %v2831_v51 = vpop.eup %2830  ;;  %v1559_v36 = vmul.f32 %v1527_v5, %v1431_v30 }
 0x265   : > { %v2327_v7 = vmul.f32 -1.442695, %v1303_v45  ;;  %v4011_v44 = vadd.f32 %v1306_v29, %v3940_v62  ;;  %v1844_v3 = vadd.f32 %v1812_v48, %v3610_v13  ;;  %v1528_v22 = vadd.f32 1.0, %v2831_v51 }
 0x266   : > { %2850 = vrcp.f32 %v1688_v34  ;;  %v1308_v6 = vpop.f32.mrf.mxu1 }
 0x267   : > { %v2833_v2 = vpop.eup %2832  ;;  %2852 = vpow2.f32 %v2327_v7  ;;  %v1309_v59 = vadd.f32 %v1308_v6, %v3936_v57  ;;  %2440 = vmatmul.mubr.f32.gmra.mxu0 %v1844_v3  ;;  %v1469_v40 = vmul.f32 0.70710677, %v4011_v44  ;;  %v1783_v7 = vsub.f32 %v1559_v36, %v3652_v1 }
 0x268   : > { %v2835_v19 = vpop.eup %2834  ;;  %v1312_v10 = vpop.f32.mrf.mxu1  ;;  %v1813_v14 = vmul.f32 %v2833_v2, %v1781_v21  ;;  %2854 = verf.f32 %v1468_v61  ;;  %v1560_v51 = vmul.f32 %v1528_v22, %v1432_v23  ;;  %v1433_v22 = vmul.f32 0.5, %v3981_v55 }
 0x269   : > { %v1689_v38 = vadd.f32 1.0, %v2835_v19  ;;  %v2837_v46 = vpop.eup %2836  ;;  %v2328_v13 = vmul.f32 -1.442695, %v1309_v59  ;;  %v4021_v58 = vadd.f32 %v1312_v10, %v3940_v62 }
 0x26a   : > { %v1314_v53 = vpop.f32.mrf.mxu1  ;;  %v1845_v18 = vadd.f32 %v1813_v14, %v3624_v32  ;;  %v1529_v19 = vadd.f32 1.0, %v2837_v46  ;;  %v1784_v36 = vsub.f32 %v1560_v51, %v3665_v4 }
 0x26b   : > { %v2839_v45 = vpop.eup %2838  ;;  %2856 = vrcp.f32 %v1689_v38  ;;  %v1315_v29 = vadd.f32 %v1314_v53, %v3936_v57  ;;  %v1470_v6 = vmul.f32 0.70710677, %v4021_v58 }
 0x26c   : > { %v2841_v34 = vpop.eup %2840  ;;  %2858 = vpow2.f32 %v2328_v13  ;;  %v1318_v48 = vpop.f32.mrf.mxu1  ;;  %2442 = vmatprep.mubr.f32.mxu0 %v1845_v18  ;;  %v1814_v5 = vmul.f32 %v2839_v45, %v1782_v54  ;;  %v1561_v23 = vmul.f32 %v1529_v19, %v1433_v22 }
 0x26d   : > { %v1690_v21 = vadd.f32 1.0, %v2841_v34  ;;  %2860 = verf.f32 %v1469_v40  ;;  %v2843_v61 = vpop.eup %2842  ;;  %v2329_v32 = vmul.f32 -1.442695, %v1315_v29  ;;  %v4029_v3 = vadd.f32 %v1318_v48, %v3940_v62 }
 0x26e   : > { %v1320_v20 = vpop.f32.mrf.mxu1  ;;  %v1846_v2 = vadd.f32 %v1814_v5, %v3638_v37  ;;  %v1530_v38 = vadd.f32 1.0, %v2843_v61  ;;  %v1434_v48 = vmul.f32 0.5, %v3989_v0 }
 0x26f   : > { %v2845_v30 = vpop.eup %2844  ;;  %2862 = vrcp.f32 %v1690_v21  ;;  %v1321_v54 = vadd.f32 %v1320_v20, %v3936_v57  ;;  %v1471_v37 = vmul.f32 0.70710677, %v4029_v3  ;;  %v1785_v20 = vsub.f32 %v1561_v23, %v3688_v42 }
 0x270   : > { %v2847_v59 = vpop.eup %2846  ;;  %2864 = vpow2.f32 %v2329_v32  ;;  %v1324_v10 = vpop.f32.mrf.mxu1  ;;  %2443 = vmatmul.mubr.f32.gmra.mxu0 %v1846_v2  ;;  %v1815_v14 = vmul.f32 %v2845_v30, %v1783_v7  ;;  %v1562_v21 = vmul.f32 %v1530_v38, %v1434_v48 }
 0x271   : > { %v1691_v40 = vadd.f32 1.0, %v2847_v59  ;;  %v2849_v13 = vpop.eup %2848  ;;  %2866 = verf.f32 %v1470_v6  ;;  %v2330_v53 = vmul.f32 -1.442695, %v1321_v54  ;;  %v4038_v34 = vadd.f32 %v1324_v10, %v3940_v62 }
 0x272   : > { %v1326_v46 = vpop.f32.mrf.mxu1  ;;  %v1847_v18 = vadd.f32 %v1815_v14, %v3652_v1  ;;  %v1531_v2 = vadd.f32 1.0, %v2849_v13  ;;  %v1435_v10 = vmul.f32 0.5, %v3996_v24  ;;  %v1786_v22 = vsub.f32 %v1562_v21, %v3699_v49 }
 0x273   : > { %v2851_v45 = vpop.eup %2850  ;;  %2868 = vrcp.f32 %v1691_v40  ;;  %v1327_v55 = vadd.f32 %v1326_v46, %v3936_v57  ;;  %v1472_v0 = vmul.f32 0.70710677, %v4038_v34  ;;  %v1436_v24 = vmul.f32 0.5, %v4006_v11 }
 0x274   : > { %v2853_v29 = vpop.eup %2852  ;;  %2870 = vpow2.f32 %v2330_v53  ;;  %v1330_v5 = vpop.f32.mrf.mxu1  ;;  %2445 = vmatprep.mubr.f32.mxu0 %v1847_v18  ;;  %v1816_v7 = vmul.f32 %v2851_v45, %v1784_v36  ;;  %v1563_v53 = vmul.f32 %v1531_v2, %v1435_v10 }
 0x275   : > { %v1692_v51 = vadd.f32 1.0, %v2853_v29  ;;  %2872 = verf.f32 %v1471_v37  ;;  %v2331_v61 = vmul.f32 -1.442695, %v1327_v55  ;;  %v2855_v32 = vpop.eup %2854  ;;  %v4048_v14 = vadd.f32 %v1330_v5, %v3940_v62 }
 0x276   : > { %v1332_v1 = vpop.f32.mrf.mxu1  ;;  %v1848_v6 = vadd.f32 %v1816_v7, %v3665_v4  ;;  %v1532_v46 = vadd.f32 1.0, %v2855_v32  ;;  %v1787_v11 = vsub.f32 %v1563_v53, %v3711_v26 }
 0x277   : > { %2874 = vrcp.f32 %v1692_v51  ;;  %v1333_v19 = vadd.f32 %v1332_v1, %v3936_v57  ;;  %v1473_v55 = vmul.f32 0.70710677, %v4048_v14 }
 0x278   : > { %v2857_v30 = vpop.eup %2856  ;;  %2876 = vpow2.f32 %v2331_v61  ;;  %v1336_v59 = vpop.f32.mrf.mxu1  ;;  %2446 = vmatmul.mubr.f32.gmra.mxu0 %v1848_v6  ;;  %v1564_v32 = vmul.f32 %v1532_v46, %v1436_v24 }
 0x279   : > { %v2859_v54 = vpop.eup %2858  ;;  %v1817_v4 = vmul.f32 %v2857_v30, %v1785_v20  ;;  %v2332_v40 = vmul.f32 -1.442695, %v1333_v19  ;;  %v4052_v13 = vadd.f32 %v1336_v59, %v3940_v62  ;;  %2878 = verf.f32 %v1472_v0 }
 0x27a   : > { %v2861_v36 = vpop.eup %2860  ;;  %v1693_v38 = vadd.f32 1.0, %v2859_v54  ;;  %v1338_v37 = vpop.f32.mrf.mxu1  ;;  %v1437_v59 = vmul.f32 0.5, %v4011_v44 }
 0x27b   : > { %v1339_v18 = vadd.f32 %v1338_v37, %v3936_v57  ;;  %v1849_v29 = vadd.f32 %v1817_v4, %v3688_v42  ;;  %v1474_v21 = vmul.f32 0.70710677, %v4052_v13  ;;  %v1533_v2 = vadd.f32 1.0, %v2861_v36 }
 0x27c   : > { %v2863_v45 = vpop.eup %2862  ;;  %2880 = vrcp.f32 %v1693_v38  ;;  %v1342_v23 = vpop.f32.mrf.mxu1  ;;  %v1788_v37 = vsub.f32 %v1564_v32, %v3727_v27 }
 0x27d   : > { %v2865_v48 = vpop.eup %2864  ;;  %2882 = vpow2.f32 %v2332_v40  ;;  %v2333_v5 = vmul.f32 -1.442695, %v1339_v18  ;;  %v1818_v7 = vmul.f32 %v2863_v45, %v1786_v22  ;;  %v4060_v61 = vadd.f32 %v1342_v23, %v3940_v62  ;;  %2448 = vmatprep.mubr.f32.mxu0 %v1849_v29 }
 0x27e   : > { %v1694_v51 = vadd.f32 1.0, %v2865_v48  ;;  %v1344_v1 = vpop.f32.mrf.mxu1  ;;  %v2867_v6 = vpop.eup %2866  ;;  %v1565_v44 = vmul.f32 %v1533_v2, %v1437_v59  ;;  %v1438_v23 = vmul.f32 0.5, %v4021_v58 }
 0x27f   : > { %2884 = vpow2.f32 %v2333_v5  ;;  %v1345_v42 = vadd.f32 %v1344_v1, %v3936_v57  ;;  %v1850_v30 = vadd.f32 %v1818_v7, %v3699_v49  ;;  %v1475_v22 = vmul.f32 0.70710677, %v4060_v61 }
 0x280   : > { %v2869_v20 = vpop.eup %2868  ;;  %2886 = vrcp.f32 %v1694_v51  ;;  %v1348_v0 = vpop.f32.mrf.mxu1  ;;  %v1534_v46 = vadd.f32 1.0, %v2867_v6 }
 0x281   : > { %v2871_v19 = vpop.eup %2870  ;;  %2888 = verf.f32 %v1473_v55  ;;  %v2334_v54 = vmul.f32 -1.442695, %v1345_v42  ;;  %v1819_v10 = vmul.f32 %v2869_v20, %v1787_v11  ;;  %v4068_v38 = vadd.f32 %v1348_v0, %v3940_v62  ;;  %2449 = vmatmul.mubr.f32.gmra.mxu0 %v1850_v30 }
 0x282   : > { %v1695_v4 = vadd.f32 1.0, %v2871_v19  ;;  %2890 = verf.f32 %v1474_v21  ;;  %v1350_v40 = vpop.f32.mrf.mxu1  ;;  %v2873_v36 = vpop.eup %2872  ;;  %v1566_v11 = vmul.f32 %v1534_v46, %v1438_v23  ;;  %v1439_v20 = vmul.f32 0.5, %v4029_v3 }
 0x283   : > { %2892 = vpow2.f32 %v2334_v54  ;;  %v1351_v49 = vadd.f32 %v1350_v40, %v3936_v57  ;;  %v1851_v45 = vadd.f32 %v1819_v10, %v3711_v26  ;;  %v1476_v5 = vmul.f32 0.70710677, %v4068_v38 }
 0x284   : > { %v2875_v53 = vpop.eup %2874  ;;  %2894 = vrcp.f32 %v1695_v4  ;;  %v1354_v18 = vpop.f32.mrf.mxu1  ;;  %v1535_v21 = vadd.f32 1.0, %v2873_v36  ;;  %v1789_v26 = vsub.f32 %v1565_v44, %v3745_v31 }
 0x285   : > { %v2877_v24 = vpop.eup %2876  ;;  %v2335_v29 = vmul.f32 -1.442695, %v1351_v49  ;;  %v1820_v48 = vmul.f32 %v2875_v53, %v1788_v37  ;;  %2896 = verf.f32 %v1475_v22  ;;  %v4076_v7 = vadd.f32 %v1354_v18, %v3940_v62  ;;  %2451 = vmatprep.mubr.f32.mxu0 %v1851_v45 }
 0x286   : > { %v1696_v55 = vadd.f32 1.0, %v2877_v24  ;;  %v1356_v51 = vpop.f32.mrf.mxu1  ;;  %v2879_v6 = vpop.eup %2878  ;;  %v1567_v10 = vmul.f32 %v1535_v21, %v1439_v20  ;;  %v1440_v53 = vmul.f32 0.5, %v4038_v34 }
 0x287   : > { %2898 = vpow2.f32 %v2335_v29  ;;  %v1357_v1 = vadd.f32 %v1356_v51, %v3936_v57  ;;  %v1852_v32 = vadd.f32 %v1820_v48, %v3727_v27  ;;  %v1477_v19 = vmul.f32 0.70710677, %v4076_v7 }
 0x288   : > { %2900 = vrcp.f32 %v1696_v55  ;;  %v1360_v58 = vpop.f32.mrf.mxu1  ;;  %v1790_v27 = vsub.f32 %v1566_v11, %v3763_v33  ;;  %v1536_v40 = vadd.f32 1.0, %v2879_v6  ;;  %v1791_v55 = vsub.f32 %v1567_v10, %v3786_v8 }
 0x289   : > { %v2881_v42 = vpop.eup %2880  ;;  %v2336_v2 = vmul.f32 -1.442695, %v1357_v1  ;;  %v4083_v0 = vadd.f32 %v1360_v58, %v3940_v62  ;;  %2902 = verf.f32 %v1476_v5  ;;  %2452 = vmatmul.mubr.f32.gmra.mxu0 %v1852_v32 }
 0x28a   : > { %v2883_v30 = vpop.eup %2882  ;;  %v1362_v59 = vpop.f32.mrf.mxu1  ;;  %v1821_v54 = vmul.f32 %v2881_v42, %v1789_v26  ;;  %v1568_v5 = vmul.f32 %v1536_v40, %v1440_v53  ;;  %v1442_v40 = vmul.f32 0.5, %v4052_v13 }
 0x28b   : > { %v1697_v4 = vadd.f32 1.0, %v2883_v30  ;;  %2904 = vpow2.f32 %v2336_v2  ;;  %v1363_v3 = vadd.f32 %v1362_v59, %v3936_v57  ;;  %v1478_v46 = vmul.f32 0.70710677, %v4083_v0 }
 0x28c   : > { %v2885_v22 = vpop.eup %2884  ;;  %v1366_v36 = vpop.f32.mrf.mxu1  ;;  %v1853_v37 = vadd.f32 %v1821_v54, %v3745_v31  ;;  %v1441_v30 = vmul.f32 0.5, %v4048_v14 }
 0x28d   : > { %v2887_v49 = vpop.eup %2886  ;;  %2906 = vrcp.f32 %v1697_v4  ;;  %v1698_v44 = vadd.f32 1.0, %v2885_v22  ;;  %v2337_v45 = vmul.f32 -1.442695, %v1363_v3  ;;  %v4092_v24 = vadd.f32 %v1366_v36, %v3940_v62 }
 0x28e   : > { %v2889_v18 = vpop.eup %2888  ;;  %2908 = verf.f32 %v1477_v19  ;;  %2454 = vmatprep.mubr.f32.mxu0 %v1853_v37  ;;  %v1368_v23 = vpop.f32.mrf.mxu1  ;;  %v1822_v29 = vmul.f32 %v2887_v49, %v1790_v27 }
 0x28f   : > { %v2891_v48 = vpop.eup %2890  ;;  %2910 = vrcp.f32 %v1698_v44  ;;  %v1369_v34 = vadd.f32 %v1368_v23, %v3936_v57  ;;  %v1537_v6 = vadd.f32 1.0, %v2889_v18  ;;  %v1479_v11 = vmul.f32 0.70710677, %v4092_v24 }
 0x290   : > { %v2893_v31 = vpop.eup %2892  ;;  %2912 = vpow2.f32 %v2337_v45  ;;  %v1372_v51 = vpop.f32.mrf.mxu1  ;;  %v1854_v21 = vadd.f32 %v1822_v29, %v3763_v33  ;;  %v1538_v19 = vadd.f32 1.0, %v2891_v48  ;;  %v1792_v33 = vsub.f32 %v1568_v5, %v3793_v50 }
 0x291   : > { %v2895_v1 = vpop.eup %2894  ;;  %v1699_v26 = vadd.f32 1.0, %v2893_v31  ;;  %2914 = verf.f32 %v1478_v46  ;;  %v2338_v58 = vmul.f32 -1.442695, %v1369_v34  ;;  %v4099_v32 = vadd.f32 %v1372_v51, %v3940_v62 }
 0x292   : > { %2455 = vmatmul.mubr.f32.gmra.mxu0 %v1854_v21  ;;  %v1374_v42 = vpop.f32.mrf.mxu1  ;;  %v1823_v20 = vmul.f32 %v2895_v1, %v1791_v55  ;;  %v2897_v2 = vpop.eup %2896  ;;  %v1569_v27 = vmul.f32 %v1537_v6, %v1441_v30  ;;  %v1570_v44 = vmul.f32 %v1538_v19, %v1442_v40  ;;  %v1443_v31 = vmul.f32 0.5, %v4060_v61 }
 0x293   : > { %2916 = vrcp.f32 %v1699_v26  ;;  %v1375_v54 = vadd.f32 %v1374_v42, %v3936_v57  ;;  %v1480_v36 = vmul.f32 0.70710677, %v4099_v32  ;;  %v1444_v61 = vmul.f32 0.5, %v4068_v38 }
 0x294   : > { %v2899_v59 = vpop.eup %2898  ;;  %2918 = vpow2.f32 %v2338_v58  ;;  %v1378_v10 = vpop.f32.mrf.mxu1  ;;  %v1855_v4 = vadd.f32 %v1823_v20, %v3786_v8  ;;  %v1539_v8 = vadd.f32 1.0, %v2897_v2  ;;  %v1793_v55 = vsub.f32 %v1569_v27, %v3806_v60 }
 0x295   : > { %v2901_v22 = vpop.eup %2900  ;;  %v1700_v3 = vadd.f32 1.0, %v2899_v59  ;;  %2920 = verf.f32 %v1479_v11  ;;  %v2339_v14 = vmul.f32 -1.442695, %v1375_v54  ;;  %v4108_v46 = vadd.f32 %v1378_v10, %v3940_v62 }
 0x296   : > { %2457 = vmatprep.mubr.f32.mxu0 %v1855_v4  ;;  %v1380_v37 = vpop.f32.mrf.mxu1  ;;  %v1824_v49 = vmul.f32 %v2901_v22, %v1792_v33  ;;  %v2903_v53 = vpop.eup %2902  ;;  %v1794_v21 = vsub.f32 %v1570_v44, %v3820_v28  ;;  %v1571_v11 = vmul.f32 %v1539_v8, %v1443_v31 }
 0x297   : > { %2922 = vrcp.f32 %v1700_v3  ;;  %v1381_v45 = vadd.f32 %v1380_v37, %v3936_v57  ;;  %v1540_v1 = vadd.f32 1.0, %v2903_v53  ;;  %v1481_v6 = vmul.f32 0.70710677, %v4108_v46 }
 0x298   : > { %v2905_v18 = vpop.eup %2904  ;;  %2924 = vpow2.f32 %v2339_v14  ;;  %v1384_v13 = vpop.f32.mrf.mxu1  ;;  %v1856_v23 = vadd.f32 %v1824_v49, %v3793_v50  ;;  %v1795_v38 = vsub.f32 %v1571_v11, %v3831_v39 }
 0x299   : > { %v1701_v29 = vadd.f32 1.0, %v2905_v18  ;;  %2926 = verf.f32 %v1480_v36  ;;  %v2340_v5 = vmul.f32 -1.442695, %v1381_v45  ;;  %v4119_v2 = vadd.f32 %v1384_v13, %v3940_v62 }
 0x29a   : > { %v2907_v48 = vpop.eup %2906  ;;  %2458 = vmatmul.mubr.f32.gmra.mxu0 %v1856_v23  ;;  %v1386_v34 = vpop.f32.mrf.mxu1  ;;  %v1572_v22 = vmul.f32 %v1540_v1, %v1444_v61  ;;  %v1445_v36 = vmul.f32 0.5, %v4076_v7 }
 0x29b   : > { %v2909_v51 = vpop.eup %2908  ;;  %2928 = vrcp.f32 %v1701_v29  ;;  %v1387_v50 = vadd.f32 %v1386_v34, %v3936_v57  ;;  %v1825_v42 = vmul.f32 %v2907_v48, %v1793_v55 }
 0x29c   : > { %v2911_v26 = vpop.eup %2910  ;;  %2930 = vpow2.f32 %v2340_v5  ;;  %v1390_v58 = vpop.f32.mrf.mxu1  ;;  %v1541_v59 = vadd.f32 1.0, %v2909_v51  ;;  %v1796_v29 = vsub.f32 %v1572_v22, %v3846_v41 }
 0x29d   : > { %v2913_v20 = vpop.eup %2912  ;;  %v1826_v30 = vmul.f32 %v2911_v26, %v1794_v21  ;;  %v2341_v54 = vmul.f32 -1.442695, %v1387_v50  ;;  %v1857_v10 = vadd.f32 %v1825_v42, %v3806_v60  ;;  %2932 = verf.f32 %v1481_v6 }
 0x29e   : > { %v2915_v19 = vpop.eup %2914  ;;  %v1702_v33 = vadd.f32 1.0, %v2913_v20  ;;  %v1392_v4 = vpop.f32.mrf.mxu1  ;;  %v4123_v27 = vadd.f32 %v1390_v58, %v3940_v62  ;;  %v1482_v60 = vmul.f32 0.70710677, %v4119_v2  ;;  %v1573_v44 = vmul.f32 %v1541_v59, %v1445_v36 }
 0x29f   : > { %v1393_v40 = vadd.f32 %v1392_v4, %v3936_v57  ;;  %2460 = vmatprep.mubr.f32.mxu0 %v1857_v10  ;;  %v1858_v37 = vadd.f32 %v1826_v30, %v3820_v28  ;;  %v1542_v18 = vadd.f32 1.0, %v2915_v19  ;;  %v1446_v28 = vmul.f32 0.5, %v4083_v0 }
 0x2a0   : > { %v2917_v3 = vpop.eup %2916  ;;  %2934 = vrcp.f32 %v1702_v33  ;;  %v1396_v14 = vpop.f32.mrf.mxu1  ;;  %v1483_v7 = vmul.f32 0.70710677, %v4123_v27  ;;  %v1797_v1 = vsub.f32 %v1573_v44, %v3853_v63  ;;  %v1447_v10 = vmul.f32 0.5, %v4092_v24 }
 0x2a1   : > { %v2919_v49 = vpop.eup %2918  ;;  %2936 = vpow2.f32 %v2341_v54  ;;  %v2342_v53 = vmul.f32 -1.442695, %v1393_v40  ;;  %2461 = vmatmul.mubr.f32.gmra.mxu0 %v1858_v37  ;;  %v1827_v13 = vmul.f32 %v2917_v3, %v1795_v38  ;;  %v4136_v51 = vadd.f32 %v1396_v14, %v3940_v62 }
 0x2a2   : > { %v1703_v8 = vadd.f32 1.0, %v2919_v49  ;;  %v1398_v45 = vpop.f32.mrf.mxu1  ;;  %v2921_v23 = vpop.eup %2920  ;;  %v1574_v6 = vmul.f32 %v1542_v18, %v1446_v28  ;;  %v1448_v38 = vmul.f32 0.5, %v4099_v32 }
 0x2a3   : > { %2938 = vpow2.f32 %v2342_v53  ;;  %v1399_v55 = vadd.f32 %v1398_v45, %v3936_v57  ;;  %v1859_v5 = vadd.f32 %v1827_v13, %v3831_v39  ;;  %v1543_v61 = vadd.f32 1.0, %v2921_v23 }
 0x2a4   : > { %v2923_v48 = vpop.eup %2922  ;;  %2940 = vrcp.f32 %v1703_v8  ;;  %v1402_v31 = vpop.f32.mrf.mxu1  ;;  %v1484_v59 = vmul.f32 0.70710677, %v4136_v51 }
 0x2a5   : > { %v2925_v34 = vpop.eup %2924  ;;  %2942 = verf.f32 %v1482_v60  ;;  %v1828_v21 = vmul.f32 %v2923_v48, %v1796_v29  ;;  %v2343_v11 = vmul.f32 -1.442695, %v1399_v55  ;;  %2463 = vmatprep.mubr.f32.mxu0 %v1859_v5  ;;  %v4140_v58 = vadd.f32 %v1402_v31, %v3940_v62 }
 0x2a6   : > { %v1704_v26 = vadd.f32 1.0, %v2925_v34  ;;  %v1404_v50 = vpop.f32.mrf.mxu1  ;;  %v2927_v0 = vpop.eup %2926  ;;  %2944 = verf.f32 %v1483_v7  ;;  %v1575_v37 = vmul.f32 %v1543_v61, %v1447_v10  ;;  %v1449_v34 = vmul.f32 0.5, %v4108_v46 }
 0x2a7   : > { %v1405_v39 = vadd.f32 %v1404_v50, %v3936_v57  ;;  %v1860_v42 = vadd.f32 %v1828_v21, %v3846_v41  ;;  %v1544_v4 = vadd.f32 1.0, %v2927_v0  ;;  %v1798_v41 = vsub.f32 %v1574_v6, %v3866_v35 }
 0x2a8   : > { %v2929_v20 = vpop.eup %2928  ;;  %2946 = vrcp.f32 %v1704_v26  ;;  %v1408_v30 = vpop.f32.mrf.mxu1  ;;  %v1485_v36 = vmul.f32 0.70710677, %v4140_v58  ;;  %v1799_v28 = vsub.f32 %v1575_v37, %v3877_v17 }
 0x2a9   : > { %v2931_v19 = vpop.eup %2930  ;;  %2948 = vpow2.f32 %v2343_v11  ;;  %v2344_v33 = vmul.f32 -1.442695, %v1405_v39  ;;  %2464 = vmatmul.mubr.f32.gmra.mxu0 %v1860_v42  ;;  %v1829_v54 = vmul.f32 %v2929_v20, %v1797_v1  ;;  %v4147_v40 = vadd.f32 %v1408_v30, %v3940_v62 }
 0x2aa   : > { %v1705_v22 = vadd.f32 1.0, %v2931_v19  ;;  %v1410_v3 = vpop.f32.mrf.mxu1  ;;  %v2933_v14 = vpop.eup %2932  ;;  %v1576_v18 = vmul.f32 %v1544_v4, %v1448_v38  ;;  %v1451_v38 = vmul.f32 0.5, %v4123_v27 }
 0x2ab   : > { %2950 = vpow2.f32 %v2344_v33  ;;  %v1411_v49 = vadd.f32 %v1410_v3, %v3936_v57  ;;  %v1861_v24 = vadd.f32 %v1829_v54, %v3853_v63  ;;  %v1486_v8 = vmul.f32 0.70710677, %v4147_v40 }
 0x2ac   : > { %2952 = vrcp.f32 %v1705_v22  ;;  %v1414_v60 = vpop.f32.mrf.mxu1  ;;  %v1545_v23 = vadd.f32 1.0, %v2933_v14  ;;  %v1800_v50 = vsub.f32 %v1576_v18, %v3883_v56  ;;  %v1450_v54 = vmul.f32 0.5, %v4119_v2 }
 0x2ad   : > { %v2935_v53 = vpop.eup %2934  ;;  %2954 = verf.f32 %v1484_v59  ;;  %v2345_v45 = vmul.f32 -1.442695, %v1411_v49  ;;  %2466 = vmatprep.mubr.f32.mxu0 %v1861_v24  ;;  %v4156_v7 = vadd.f32 %v1414_v60, %v3940_v62 }
 0x2ae   : > { %v2937_v44 = vpop.eup %2936  ;;  %v1416_v32 = vpop.f32.mrf.mxu1  ;;  %v1830_v13 = vmul.f32 %v2935_v53, %v1798_v41  ;;  %2956 = verf.f32 %v1485_v36  ;;  %v1577_v0 = vmul.f32 %v1545_v23, %v1449_v34 }
 0x2af   : > { %v1706_v29 = vadd.f32 1.0, %v2937_v44  ;;  %2958 = vpow2.f32 %v2345_v45  ;;  %v1417_v63 = vadd.f32 %v1416_v32, %v3936_v57  ;;  %v1487_v39 = vmul.f32 0.70710677, %v4156_v7 }
 0x2b0   : > { %v2939_v48 = vpop.eup %2938  ;;  %v1420_v55 = vpop.f32.mrf.mxu1  ;;  %v1862_v31 = vadd.f32 %v1830_v13, %v3866_v35  ;;  %v1801_v3 = vsub.f32 %v1577_v0, %v3892_v9  ;;  %v1452_v45 = vmul.f32 0.5, %v4136_v51 }
 0x2b1   : > { %v2941_v5 = vpop.eup %2940  ;;  %2960 = vrcp.f32 %v1706_v29  ;;  %v1707_v21 = vadd.f32 1.0, %v2939_v48  ;;  %v2346_v6 = vmul.f32 -1.442695, %v1417_v63  ;;  %v4165_v35 = vadd.f32 %v1420_v55, %v3940_v62 }
 0x2b2   : > { %v2943_v1 = vpop.eup %2942  ;;  %2962 = verf.f32 %v1486_v8  ;;  %2467 = vmatmul.mubr.f32.gmra.mxu0 %v1862_v31  ;;  %v1422_v26 = vpop.f32.mrf.mxu1  ;;  %v1831_v11 = vmul.f32 %v2941_v5, %v1799_v28 }
 0x2b3   : > { %2964 = vrcp.f32 %v1707_v21  ;;  %v2945_v42 = vpop.eup %2944  ;;  %v1423_v46 = vadd.f32 %v1422_v26, %v3936_v57  ;;  %v1546_v30 = vadd.f32 1.0, %v2943_v1  ;;  %v1488_v62 = vmul.f32 0.70710677, %v4165_v35 }
 0x2b4   : > { %2966 = vpow2.f32 %v2346_v6  ;;  %v1863_v20 = vadd.f32 %v1831_v11, %v3877_v17  ;;  %v1547_v10 = vadd.f32 1.0, %v2945_v42  ;;  %v1454_v26 = vmul.f32 0.5, %v4147_v40 }
 0x2b5   : > { %v2947_v61 = vpop.eup %2946  ;;  %v2347_v59 = vmul.f32 -1.442695, %v1423_v46  ;;  %2968 = verf.f32 %v1487_v39  ;;  %v1578_v41 = vmul.f32 %v1546_v30, %v1450_v54 }
 0x2b6   : > { %v2949_v19 = vpop.eup %2948  ;;  %2469 = vmatprep.mubr.f32.mxu0 %v1863_v20  ;;  %v1832_v33 = vmul.f32 %v2947_v61, %v1800_v50  ;;  %v1579_v37 = vmul.f32 %v1547_v10, %v1451_v38  ;;  %v1455_v20 = vmul.f32 0.5, %v4156_v7 }
 0x2b7   : > { %v1708_v4 = vadd.f32 1.0, %v2949_v19  ;;  %2970 = vpow2.f32 %v2347_v59  ;;  %v1802_v53 = vsub.f32 %v1578_v41, %v3898_v52 }
 0x2b8   : > { %v2951_v22 = vpop.eup %2950  ;;  %v1864_v57 = vadd.f32 %v1832_v33, %v3883_v56  ;;  %v1803_v27 = vsub.f32 %v1579_v37, %v3904_v15  ;;  %v1456_v33 = vmul.f32 0.5, %v4165_v35  ;;  %v4197_v35 = vld [vmem:[%s4323_s6] ss:$0 sm:$0xff] }
 0x2b9   : > { %v2953_v17 = vpop.eup %2952  ;;  %2972 = vrcp.f32 %v1708_v4  ;;  %v1709_v36 = vadd.f32 1.0, %v2951_v22 }
 0x2ba   : > { %v2955_v14 = vpop.eup %2954  ;;  %2470 = vmatmul.mubr.f32.gmra.mxu0 %v1864_v57  ;;  %v1833_v2 = vmul.f32 %v2953_v17, %v1801_v3 }
 0x2bb   : > { %2974 = vrcp.f32 %v1709_v36  ;;  %v2957_v49 = vpop.eup %2956  ;;  %v1548_v44 = vadd.f32 1.0, %v2955_v14 }
 0x2bc   : > { %2976 = verf.f32 %v1488_v62  ;;  %v1865_v60 = vadd.f32 %v1833_v2, %v3892_v9  ;;  %v2959_v24 = vpop.eup %2958  ;;  %v1549_v32 = vadd.f32 1.0, %v2957_v49  ;;  %v1453_v9 = vmul.f32 0.5, %v4140_v58 }
 0x2bd   : > { %v1710_v18 = vadd.f32 1.0, %v2959_v24  ;;  %v1580_v48 = vmul.f32 %v1548_v44, %v1452_v45 }
 0x2be   : > { %v2961_v56 = vpop.eup %2960  ;;  %2472 = vmatprep.mubr.f32.mxu0 %v1865_v60  ;;  %v1581_v31 = vmul.f32 %v1549_v32, %v1453_v9 }
 0x2bf   : > { %v2963_v8 = vpop.eup %2962  ;;  %v1834_v13 = vmul.f32 %v2961_v56, %v1802_v53  ;;  %2978 = vrcp.f32 %v1710_v18  ;;  %v1804_v1 = vsub.f32 %v1580_v48, %v3910_v47 }
 0x2c0   : > { %v2965_v23 = vpop.eup %2964  ;;  %v1550_v21 = vadd.f32 1.0, %v2963_v8  ;;  %v1805_v58 = vsub.f32 %v1581_v31, %v3915_v43 }
 0x2c1   : > { %v2967_v29 = vpop.eup %2966  ;;  %v1866_v28 = vadd.f32 %v1834_v13, %v3898_v52  ;;  %v1835_v63 = vmul.f32 %v2965_v23, %v1803_v27 }
 0x2c2   : > { %v1711_v55 = vadd.f32 1.0, %v2967_v29  ;;  %v2969_v34 = vpop.eup %2968  ;;  %v1582_v0 = vmul.f32 %v1550_v21, %v1454_v26 }
 0x2c3   : > { %2473 = vmatmul.mubr.f32.gmra.mxu0 %v1866_v28  ;;  %v1867_v5 = vadd.f32 %v1835_v63, %v3904_v15  ;;  %v1551_v39 = vadd.f32 1.0, %v2969_v34 }
 0x2c4   : > { %2980 = vrcp.f32 %v1711_v55  ;;  %v2971_v51 = vpop.eup %2970  ;;  %v1806_v30 = vsub.f32 %v1582_v0, %v3920_v16 }
 0x2c5   : > { %2475 = vmatprep.mubr.f32.mxu0 %v1867_v5  ;;  %v1712_v11 = vadd.f32 1.0, %v2971_v51  ;;  %v1583_v40 = vmul.f32 %v1551_v39, %v1455_v20 }
 0x2c6   : > { %v2973_v6 = vpop.eup %2972 }
 0x2c7   : > { %v1836_v52 = vmul.f32 %v2973_v6, %v1804_v1  ;;  %2982 = vrcp.f32 %v1712_v11  ;;  %v1807_v10 = vsub.f32 %v1583_v40, %v3924_v25 }
 0x2c8   : > { %v2975_v50 = vpop.eup %2974 }
 0x2c9   : > { %v2977_v42 = vpop.eup %2976  ;;  %v1868_v15 = vadd.f32 %v1836_v52, %v3910_v47  ;;  %v1837_v46 = vmul.f32 %v2975_v50, %v1805_v58 }
 0x2ca   : > { %v1552_v19 = vadd.f32 1.0, %v2977_v42 }
 0x2cb   : > { %2476 = vmatmul.mubr.f32.gmra.mxu0 %v1868_v15  ;;  %v1869_v61 = vadd.f32 %v1837_v46, %v3915_v43 }
 0x2cc   : > { %v2979_v59 = vpop.eup %2978  ;;  %v1584_v4 = vmul.f32 %v1552_v19, %v1456_v33 }
 0x2cd   : > { %2478 = vmatprep.mubr.f32.mxu0 %v1869_v61  ;;  %v1838_v54 = vmul.f32 %v2979_v59, %v1806_v30 }
 0x2ce   : > { %v1808_v43 = vsub.f32 %v1584_v4, %v3928_v12 }
 0x2cf   : > { %v1870_v47 = vadd.f32 %v1838_v54, %v3920_v16 }
 0x2d1   : > { %v2981_v22 = vpop.eup %2980  ;;  %2479 = vmatmul.mubr.f32.gmra.mxu0 %v1870_v47 }
 0x2d2   : > { %v1839_v7 = vmul.f32 %v2981_v22, %v1807_v10 }
 0x2d4   : > { %v1871_v3 = vadd.f32 %v1839_v7, %v3924_v25  ;;  %v2983_v62 = vpop.eup %2982 }
 0x2d5   : > { %v1840_v57 = vmul.f32 %v2983_v62, %v1808_v43 }
 0x2d6   : > { %2481 = vmatprep.mubr.f32.mxu0 %v1871_v3 }
 0x2d7   : > { %v1872_v17 = vadd.f32 %v1840_v57, %v3928_v12 }
 0x2d9   : > { %2482 = vmatmul.mubr.f32.gmra.mxu0 %v1872_v17 }
 0x31f   : > { %v2438_v41 = vpop.f32.mrf.mxu0 }
 0x320   : > { %v1968_v16 = vadd.f32 %v2438_v41, %v4197_v35 }
 0x321   : > { %v1962_v38 = vpop.f32.mrf.mxu0 }
 0x322   : > { %2122 = vst [vmem:[%s4202_s14 + $0x8] sm:$0xff] %v1968_v16  ;;  %v1963_v25 = vadd.f32 %v4197_v35, %v1962_v38 }
 0x324   : > { %2121 = vst [vmem:[%s4202_s14] sm:$0xff] %v1963_v25 }
 0x327   : > { %v2441_v12 = vpop.f32.mrf.mxu0 }
 0x328   : > { %v1978_v36 = vadd.f32 %v2441_v12, %v4197_v35 }
 0x329   : > { %v1972_v14 = vpop.f32.mrf.mxu0 }
 0x32a   : > { %2124 = vst [vmem:[%s4202_s14 + $0x18] sm:$0xff] %v1978_v36  ;;  %v1973_v2 = vadd.f32 %v4197_v35, %v1972_v14 }
 0x32c   : > { %2123 = vst [vmem:[%s4202_s14 + $0x10] sm:$0xff] %v1973_v2 }
 0x330   : > { %v2444_v37 = vpop.f32.mrf.mxu0 }
 0x331   : > { %v1988_v49 = vadd.f32 %v2444_v37, %v4197_v35 }
 0x332   : > { %v1982_v60 = vpop.f32.mrf.mxu0 }
 0x333   : > { %2126 = vst [vmem:[%s4202_s14 + $0x28] sm:$0xff] %v1988_v49  ;;  %v1983_v24 = vadd.f32 %v4197_v35, %v1982_v60 }
 0x335   : > { %2125 = vst [vmem:[%s4202_s14 + $0x20] sm:$0xff] %v1983_v24 }
 0x338   : > { %v2447_v53 = vpop.f32.mrf.mxu0 }
 0x339   : > { %v1998_v44 = vadd.f32 %v2447_v53, %v4197_v35 }
 0x33a   : > { %v1992_v56 = vpop.f32.mrf.mxu0 }
 0x33b   : > { %2128 = vst [vmem:[%s4202_s14 + $0x38] sm:$0xff] %v1998_v44  ;;  %v1993_v18 = vadd.f32 %v4197_v35, %v1992_v56 }
 0x33d   : > { %2127 = vst [vmem:[%s4202_s14 + $0x30] sm:$0xff] %v1993_v18 }
 0x341   : > { %v2450_v8 = vpop.f32.mrf.mxu0 }
 0x342   : > { %v2008_v27 = vadd.f32 %v2450_v8, %v4197_v35 }
 0x343   : > { %v2002_v45 = vpop.f32.mrf.mxu0 }
 0x344   : > { %2130 = vst [vmem:[%s4202_s14 + $0x48] sm:$0xff] %v2008_v27  ;;  %v2003_v32 = vadd.f32 %v4197_v35, %v2002_v45 }
 0x346   : > { %2129 = vst [vmem:[%s4202_s14 + $0x40] sm:$0xff] %v2003_v32 }
 0x349   : > { %v2453_v13 = vpop.f32.mrf.mxu0 }
 0x34a   : > { %v2018_v23 = vadd.f32 %v2453_v13, %v4197_v35 }
 0x34b   : > { %v2012_v29 = vpop.f32.mrf.mxu0 }
 0x34c   : > { %2132 = vst [vmem:[%s4202_s14 + $0x58] sm:$0xff] %v2018_v23  ;;  %v2013_v48 = vadd.f32 %v4197_v35, %v2012_v29 }
 0x34e   : > { %2131 = vst [vmem:[%s4202_s14 + $0x50] sm:$0xff] %v2013_v48 }
 0x352   : > { %v2456_v9 = vpop.f32.mrf.mxu0 }
 0x353   : > { %v2028_v28 = vadd.f32 %v2456_v9, %v4197_v35 }
 0x354   : > { %v2022_v63 = vpop.f32.mrf.mxu0 }
 0x355   : > { %2134 = vst [vmem:[%s4202_s14 + $0x68] sm:$0xff] %v2028_v28  ;;  %v2023_v55 = vadd.f32 %v4197_v35, %v2022_v63 }
 0x357   : > { %2133 = vst [vmem:[%s4202_s14 + $0x60] sm:$0xff] %v2023_v55 }
 0x35a   : > { %v2459_v31 = vpop.f32.mrf.mxu0 }
 0x35b   : > { %v2038_v5 = vadd.f32 %v2459_v31, %v4197_v35 }
 0x35c   : > { %v2032_v34 = vpop.f32.mrf.mxu0 }
 0x35d   : > { %2136 = vst [vmem:[%s4202_s14 + $0x78] sm:$0xff] %v2038_v5  ;;  %v2033_v21 = vadd.f32 %v4197_v35, %v2032_v34 }
 0x35f   : > { %2135 = vst [vmem:[%s4202_s14 + $0x70] sm:$0xff] %v2033_v21 }
 0x361   : > { %v2462_v51 = vpop.f32.mrf.mxu0 }
 0x362   : > { %v2048_v1 = vadd.f32 %v2462_v51, %v4197_v35 }
 0x363   : > { %v2042_v6 = vpop.f32.mrf.mxu0 }
 0x364   : > { %2138 = vst [vmem:[%s4202_s14 + $0x88] sm:$0xff] %v2048_v1  ;;  %v2043_v26 = vadd.f32 %v4197_v35, %v2042_v6 }
 0x366   : > { %2137 = vst [vmem:[%s4202_s14 + $0x80] sm:$0xff] %v2043_v26 }
 0x369   : > { %v2465_v11 = vpop.f32.mrf.mxu0 }
 0x36a   : > { %v2058_v58 = vadd.f32 %v2465_v11, %v4197_v35 }
 0x36b   : > { %v2052_v52 = vpop.f32.mrf.mxu0 }
 0x36c   : > { %2140 = vst [vmem:[%s4202_s14 + $0x98] sm:$0xff] %v2058_v58  ;;  %v2053_v50 = vadd.f32 %v4197_v35, %v2052_v52 }
 0x36e   : > { %2139 = vst [vmem:[%s4202_s14 + $0x90] sm:$0xff] %v2053_v50 }
 0x372   : > { %v2468_v0 = vpop.f32.mrf.mxu0 }
 0x373   : > { %v2068_v39 = vadd.f32 %v2468_v0, %v4197_v35 }
 0x374   : > { %v2062_v42 = vpop.f32.mrf.mxu0 }
 0x375   : > { %2142 = vst [vmem:[%s4202_s14 + $0xa8] sm:$0xff] %v2068_v39  ;;  %v2063_v15 = vadd.f32 %v4197_v35, %v2062_v42 }
 0x377   : > { %2141 = vst [vmem:[%s4202_s14 + $0xa0] sm:$0xff] %v2063_v15 }
 0x37a   : > { %v2471_v46 = vpop.f32.mrf.mxu0 }
 0x37b   : > { %v2078_v20 = vadd.f32 %v2471_v46, %v4197_v35 }
 0x37c   : > { %v2072_v61 = vpop.f32.mrf.mxu0 }
 0x37d   : > { %2144 = vst [vmem:[%s4202_s14 + $0xb8] sm:$0xff] %v2078_v20  ;;  %v2073_v30 = vadd.f32 %v4197_v35, %v2072_v61 }
 0x37f   : > { %2143 = vst [vmem:[%s4202_s14 + $0xb0] sm:$0xff] %v2073_v30 }
 0x383   : > { %v2474_v40 = vpop.f32.mrf.mxu0 }
 0x384   : > { %v2088_v19 = vadd.f32 %v2474_v40, %v4197_v35 }
 0x385   : > { %v2082_v59 = vpop.f32.mrf.mxu0 }
 0x386   : > { %2146 = vst [vmem:[%s4202_s14 + $0xc8] sm:$0xff] %v2088_v19  ;;  %v2083_v33 = vadd.f32 %v4197_v35, %v2082_v59 }
 0x388   : > { %2145 = vst [vmem:[%s4202_s14 + $0xc0] sm:$0xff] %v2083_v33 }
 0x38b   : > { %v2477_v54 = vpop.f32.mrf.mxu0 }
 0x38c   : > { %v2098_v10 = vadd.f32 %v2477_v54, %v4197_v35 }
 0x38d   : > { %v2092_v4 = vpop.f32.mrf.mxu0 }
 0x38e   : > { %2148 = vst [vmem:[%s4202_s14 + $0xd8] sm:$0xff] %v2098_v10  ;;  %v2093_v47 = vadd.f32 %v4197_v35, %v2092_v4 }
 0x390   : > { %2147 = vst [vmem:[%s4202_s14 + $0xd0] sm:$0xff] %v2093_v47 }
 0x391   : > { %v2480_v22 = vpop.f32.mrf.mxu0 }
 0x392   : > { %v2108_v7 = vadd.f32 %v2480_v22, %v4197_v35 }
 0x393   : > { %v2102_v43 = vpop.f32.mrf.mxu0 }
 0x394   : > { %2150 = vst [vmem:[%s4202_s14 + $0xe8] sm:$0xff] %v2108_v7  ;;  %v2103_v3 = vadd.f32 %v4197_v35, %v2102_v43 }
 0x396   : > { %2149 = vst [vmem:[%s4202_s14 + $0xe0] sm:$0xff] %v2103_v3 }
 0x399   : > { %v2483_v62 = vpop.f32.mrf.mxu0 }
 0x39a   : > { %v2118_v57 = vadd.f32 %v2483_v62, %v4197_v35 }
 0x39b   : > { %v2112_v17 = vpop.f32.mrf.mxu0 }
 0x39c   : > { %2152 = vst [vmem:[%s4202_s14 + $0xf8] sm:$0xff] %v2118_v57  ;;  %v2113_v41 = vadd.f32 %v4197_v35, %v2112_v17 }
 0x39e   : > { %2151 = vst [vmem:[%s4202_s14 + $0xf0] sm:$0xff] %v2113_v41 }
 0x39f   : > { %3121 = shalt.err (!%p3118_p9)
}
 0x3a0   : > { %s3122_s10 = scalar_lea.hbm %s4269_s1, 4096  ;;  %s3126_s29 = scalar_lea.hbm %s4324_s7, 8192 }
 0x3a1   : > { %p3123_p1 = scmp.ne.s32.totalorder %s4269_s1, %s3122_s10  ;;  %p3127_p11 = scmp.lt.s32.totalorder %s4269_s1, %s4324_s7 }
 0x3a2   : > { %p3128_p13 = scmp.lt.s32.totalorder %s3126_s29, %s3122_s10 }
 0x3a3   : > { %p3124_p8 = pnand %p3123_p1, %p4348_p6 }
 0x3a4   : > { %p3129_p2 = por %p3128_p13, %p3127_p11 }
 0x3a5   : > { %p3125_p10 = pneg %p3124_p8 }
 0x3a7   : > { %p3130_p4 = pnand %p3129_p2, %p3125_p10 }
 0x3a9   : > { %3133 = shalt.err (!%p3130_p4)
}
 0x3aa   : > { %s3192_s11 = smov 128   ;;  %s3193_s23 = smov 8  }
 0x3ab   : > { %2530 = dma.vmem_to_hbm [thread:$0]  (%p4348_p6), %s4271_s22, 4096, %s4269_s1, %s2154_s28, %s3192_s11, %s3192_s11, %s3193_s23  }
 0x3ac PF: > { %s2182_s16 = sand.u32 1, %s3168_s24   ;;  %p4349_p12 = scmp.ne.s32.totalorder %s4333_s8, 0 }
 0x3ad   : > { %p4350_p0 = scmp.ge.s32.totalorder %s3180_s27, 2  ;;  %s2183_s18 = scalar_lea.sflag [#allocation4], %s2182_s16 }
 0x3af   : > { %p2547_p5 = pnand %p4350_p0, %p4349_p12 }
 0x3b1   : > { %p2548_p3 = pneg %p2547_p5 }
 0x3b3   : > { %3163 = dma.done.wait (%p2548_p3), %s2183_s18, 4096  }
 0x3b4   : > { %3165 = vsyncadd (%p2548_p3), %s2183_s18, 4294963200  ;;  %p22_p7 = scmp.ge.s32.totalorder %s3317_s17, 4   ;;  %s4351_s24 = smov %s3172_s25 }
 0x3b5   : > { %s4352_s25 = smov %s3176_s26  ;;  %s4353_s26 = smov %s3327_s20 }
 0x3b6   : > { %s4354_s27 = smov %s3317_s17  ;;  %24 = sbr.rel (!%p22_p7) target bundleno = 9 (0x9), region = 105 }
 0x3bb   :  { %2188 = vsyncpa [#allocation3], 1 }
 0x3bc   :  { %2190 = vsyncpa [#allocation3 + $0x1], 1 }
 0x3bd   :  { %2191 = vsyncpa [#allocation6], 1 }
 0x3be   :  { %2192 = vsyncpa [#allocation9], 1 }
 0x3bf   :  { %2193 = vsyncpa [#allocation4], 1 }
 0x3c0   :  { %2195 = vsyncpa [#allocation4 + $0x1], 1 }

</bundles_post_ra>
